<compile_context>
chip_gen: v7x
topology: tpu7x:2x2x1
jax: 0.10.0
libtpu: 0.0.40
codegen_flags: <defaults>
</compile_context>

<pallas_src>
import functools

import jax
import jax.numpy as jnp
from jax import lax
from jax.experimental import pallas as pl
from jax.experimental.pallas import tpu as pltpu


_CHUNK_ROWS = 8       # sublane height of the register-resident working set
_W_UNROLL_MAX = 32    # statically unroll the W sweep up to this width


def _holo_loss_kernel(r_ref, t_ref, o_ref, *, timesteps, t_pad, width,
                      chunk_h, n_chunks):
    """One (batch, h-tile) grid step.

    r_ref / t_ref : (tile_h, W) channel-0 blocks (batch/channel dims squeezed).
    o_ref         : (1, 1, 1, 1) partial sum of squared hologram differences.
    """
    # Shared lane iota over the padded timestep axis (chunk_h x t_pad ~ 8
    # vregs), hoisted out of both loops and reused by both holograms.
    t_iota = lax.broadcasted_iota(jnp.int32, (chunk_h, t_pad), 1)

    use_w_fori = width > _W_UNROLL_MAX
    if use_w_fori:
        # Lane iota over the image width; used to extract column w via a
        # masked cross-lane reduction (avoids dynamic lane slicing).
        w_iota = lax.broadcasted_iota(jnp.int32, (chunk_h, width), 1)

    def quantize(x):
        # q = int(x*T) - 1 (truncation toward zero, like torch .to(int64)).
        # NOTE: assumes the module's input domain x in [0, 1]; negative inputs
        # or x > 1 would diverge from torch's indexing/wrap behaviour.
        q = (x * timesteps).astype(jnp.int32) - 1
        # Torch negative-index wrap: q in [-T, -1] -> q + T (exact for x in [0,1]).
        q = jnp.where(q < 0, q + timesteps, q)
        # Fold the nonzero mask into q: sentinel bin t_pad never matches t_iota.
        return jnp.where(x != 0.0, q, t_pad)

    def build_holograms(q_r, q_t):
        # Running "last write wins" scatter: w increases monotonically, so a
        # plain select reproduces the PyTorch row-major scatter order
        # (== largest matching w, else 0).
        holo0 = jnp.zeros((chunk_h, t_pad), jnp.int32)
        if not use_w_fori:
            holo_r = holo_t = holo0
            for w in range(width):                        # static lane slices
                holo_r = jnp.where(q_r[:, w:w + 1] == t_iota, w, holo_r)
                holo_t = jnp.where(q_t[:, w:w + 1] == t_iota, w, holo_t)
            return holo_r, holo_t

        def w_body(w, carry):
            holo_r, holo_t = carry
            sel = w_iota == w
            # Exactly one lane selected -> the sum IS column w (sentinel incl.).
            col_r = jnp.sum(jnp.where(sel, q_r, 0), axis=1, keepdims=True)
            col_t = jnp.sum(jnp.where(sel, q_t, 0), axis=1, keepdims=True)
            holo_r = jnp.where(col_r == t_iota, w, holo_r)
            holo_t = jnp.where(col_t == t_iota, w, holo_t)
            return holo_r, holo_t

        return lax.fori_loop(0, width, w_body, (holo0, holo0), unroll=8)

    def chunk_body(c, acc):
        row0 = c * chunk_h
        if not isinstance(row0, int):
            row0 = pl.multiple_of(row0, chunk_h)
        # Channel-0 rows of this 8-row chunk; cast to f32 in-kernel.
        x_r = r_ref[pl.ds(row0, chunk_h), :].astype(jnp.float32)
        x_t = t_ref[pl.ds(row0, chunk_h), :].astype(jnp.float32)
        holo_r, holo_t = build_holograms(quantize(x_r), quantize(x_t))
        diff = (holo_r - holo_t).astype(jnp.float32)
        d2 = diff * diff
        # Fold the (chunk_h, t_pad) squared diff into one (chunk_h, 128) vreg:
        # aligned lane-group slices are free vreg selections + VALU adds.
        for g in range(t_pad // 128):
            acc = acc + d2[:, g * 128:(g + 1) * 128]
        return acc

    acc0 = jnp.zeros((chunk_h, 128), jnp.float32)
    if n_chunks == 1:
        acc = chunk_body(0, acc0)
    else:
        acc = lax.fori_loop(0, n_chunks, chunk_body, acc0)

    # Single cross-lane reduction + tiny store per grid step.
    o_ref[...] = jnp.sum(acc, keepdims=True).reshape(o_ref.shape)


def _pick_tile_h(H):
    """Largest h-tile <= 128 that divides H, preferring multiples of 16 (bf16
    sublane packing), then 8; fall back to the full extent for small/odd H
    (full-extent blocks are always legal)."""
    for mult in (16, 8):
        for d in range(min(H, 128), mult - 1, -1):
            if H % d == 0 and d % mult == 0:
                return d
    return H


def simple3d_loss(reconstructed_image, target_image, *, timesteps=1000, tile_h=None):
    """Pallas implementation of simple3DlossOLD.forward (returns scalar MSE)."""
    B, C, H, W = reconstructed_image.shape
    assert target_image.shape == (B, C, H, W)

    if tile_h is None:
        tile_h = _pick_tile_h(H)
    assert H % tile_h == 0
    n_hi = H // tile_h

    chunk_h = _CHUNK_ROWS if tile_h % _CHUNK_ROWS == 0 else tile_h
    n_chunks = tile_h // chunk_h

    # Lane-dense timestep axis; padded bins can never be hit (q <= T-1), so
    # they contribute 0 to both holograms and hence 0 to the squared diff.
    t_pad = ((timesteps + 127) // 128) * 128

    kernel = functools.partial(
        _holo_loss_kernel, timesteps=timesteps, t_pad=t_pad, width=W,
        chunk_h=chunk_h, n_chunks=n_chunks)

    partials = pl.pallas_call(
        kernel,
        out_shape=jax.ShapeDtypeStruct((B, n_hi, 1, 1), jnp.float32),
        grid_spec=pltpu.PrefetchScalarGridSpec(
            num_scalar_prefetch=0,
            grid=(B, n_hi),
            in_specs=[
                # Full NCHW arrays; channel 0 selected via the index_map, so
                # only the channel-0 slab is ever DMA'd; batch/channel dims
                # are squeezed away from the kernel view.
                pl.BlockSpec((None, None, tile_h, W), lambda b, hi: (b, 0, hi, 0)),
                pl.BlockSpec((None, None, tile_h, W), lambda b, hi: (b, 0, hi, 0)),
            ],
            # Per-(batch, h-tile) partial sums: no cross-step scratch, so both
            # grid axes are embarrassingly parallel (keeps both v7x TCs busy).
            out_specs=pl.BlockSpec((1, 1, 1, 1), lambda b, hi: (b, hi, 0, 0)),
        ),
        compiler_params=pltpu.CompilerParams(
            dimension_semantics=("parallel", "parallel"),
            vmem_limit_bytes=32 * 1024 * 1024,  # actual footprint is ~1-2 MiB
        ),
    )(reconstructed_image, target_image)

    # MSE mean is over the full (B, C, H, timesteps) hologram tensor; channels
    # >= 1 are zero in both holograms so they only enlarge the denominator.
    denom = jnp.float32(B * C * H * timesteps)
    return jnp.sum(partials) / denom


def _reference_loss(recon, target, timesteps):
    """Pure-JAX (non-Pallas) reference with identical semantics, for checking."""
    B, C, H, W = recon.shape

    def holo(x):  # x: (B, H, W)
        q = (x * timesteps).astype(jnp.int32) - 1
        q = jnp.mod(q, timesteps)
        nz = x != 0
        t_iota = jnp.arange(timesteps, dtype=jnp.int32)
        w_iota = jnp.arange(W, dtype=jnp.int32)
        hit = (q[..., None] == t_iota[None, None, None, :]) & nz[..., None]
        contrib = jnp.where(hit, w_iota[None, None, :, None], 0)
        return jnp.max(contrib, axis=2)  # (B, H, T)

    hr = holo(recon[:, 0].astype(jnp.float32))
    ht = holo(target[:, 0].astype(jnp.float32))
    sse = jnp.sum((hr - ht).astype(jnp.float32) ** 2)
    return sse / jnp.float32(B * C * H * timesteps)


if __name__ == "__main__":
    def make_sparse(key, shape, density=0.3):
        kv, km = jax.random.split(key)
        vals = jax.random.uniform(kv, shape, dtype=jnp.float32)  # values in [0, 1)
        mask = jax.random.bernoulli(km, density, shape)
        return jnp.where(mask, vals, 0.0)

    key = jax.random.PRNGKey(0)

    # Case 1: module-default timesteps, small W (static unrolled path),
    #         single h-tile per batch element.
    # Case 2: multiple h-tiles (parallel grid), W > 32 (fori_loop path),
    #         non-default timesteps (different lane padding).
    cases = [
        ((2, 4, 16, 16), 1000),
        ((2, 2, 160, 48), 500),
    ]

    for shape, T in cases:
        key, kr, kt = jax.random.split(key, 3)
        recon = make_sparse(kr, shape)
        target = make_sparse(kt, shape)

        loss = jax.block_until_ready(simple3d_loss(recon, target, timesteps=T))
        ref = jax.block_until_ready(_reference_loss(recon, target, T))
        assert jnp.allclose(loss, ref, rtol=1e-5, atol=1e-6), (shape, T, loss, ref)

    print("KERNEL_OK")
</pallas_src>

<mosaic_0001>
module attributes {stable_mosaic.version = 11 : i64} {
  func.func @_holo_loss_kernel(%arg0: i32, %arg1: i32, %arg2: memref<1x1x16x16xf32, #tpu.memory_space<vmem>>, %arg3: memref<1x1x16x16xf32, #tpu.memory_space<vmem>>, %arg4: memref<1x1x1x1xf32, #tpu.memory_space<vmem>>) attributes {dimension_semantics = [#tpu.dimension_semantics<parallel>, #tpu.dimension_semantics<parallel>], iteration_bounds = array<i64: 2, 1>, scalar_prefetch = 0 : i64, scratch_operands = 0 : i64, tpu.core_type = #tpu.core_type<tc>, window_params = [{transform_indices = @transform_0, window_bounds = array<i64: 1, 1, 16, 16>}, {transform_indices = @transform_1, window_bounds = array<i64: 1, 1, 16, 16>}, {transform_indices = @transform_2, window_bounds = array<i64: 1, 1, 1, 1>}]} {
    %0 = tpu.iota {dimensions = array<i32: 1>} : vector<8x1024xi32>
    %cst = arith.constant 0.000000e+00 : f32
    %1 = vector.broadcast %cst : f32 to vector<8x128xf32>
    %c0_i32 = arith.constant 0 : i32
    %c2_i32 = arith.constant 2 : i32
    %2 = arith.addi %c0_i32, %c2_i32 : i32
    %c1_i32 = arith.constant 1 : i32
    %3 = scf.for %arg5 = %c0_i32 to %2 step %c1_i32 iter_args(%arg6 = %1) -> (vector<8x128xf32>)  : i32 {
      %c8_i32 = arith.constant 8 : i32
      %11 = arith.muli %arg5, %c8_i32 : i32
      %12 = tpu.assume_multiple %11, 8 : i32
      %c0_5 = arith.constant 0 : index
      %c0_6 = arith.constant 0 : index
      %13 = arith.index_cast %12 : i32 to index
      %c0_7 = arith.constant 0 : index
      %14 = vector.load %arg2[%c0_5, %c0_6, %13, %c0_7] : memref<1x1x16x16xf32, #tpu.memory_space<vmem>>, vector<1x1x8x16xf32>
      %15 = vector.shape_cast %14 : vector<1x1x8x16xf32> to vector<8x16xf32>
      %c0_8 = arith.constant 0 : index
      %c0_9 = arith.constant 0 : index
      %16 = arith.index_cast %12 : i32 to index
      %c0_10 = arith.constant 0 : index
      %17 = vector.load %arg3[%c0_8, %c0_9, %16, %c0_10] : memref<1x1x16x16xf32, #tpu.memory_space<vmem>>, vector<1x1x8x16xf32>
      %18 = vector.shape_cast %17 : vector<1x1x8x16xf32> to vector<8x16xf32>
      %cst_11 = arith.constant 1.000000e+03 : f32
      %19 = vector.broadcast %cst_11 : f32 to vector<8x16xf32>
      %20 = arith.mulf %15, %19 : vector<8x16xf32>
      %21 = arith.fptosi %20 : vector<8x16xf32> to vector<8x16xi32>
      %c1_i32_12 = arith.constant 1 : i32
      %22 = vector.broadcast %c1_i32_12 : i32 to vector<8x16xi32>
      %23 = arith.subi %21, %22 : vector<8x16xi32>
      %c0_i32_13 = arith.constant 0 : i32
      %24 = vector.broadcast %c0_i32_13 : i32 to vector<8x16xi32>
      %25 = arith.cmpi slt, %23, %24 : vector<8x16xi32>
      %c1000_i32 = arith.constant 1000 : i32
      %26 = vector.broadcast %c1000_i32 : i32 to vector<8x16xi32>
      %27 = arith.addi %23, %26 : vector<8x16xi32>
      %28 = arith.select %25, %27, %23 : vector<8x16xi1>, vector<8x16xi32>
      %cst_14 = arith.constant 0.000000e+00 : f32
      %29 = vector.broadcast %cst_14 : f32 to vector<8x16xf32>
      %30 = arith.cmpf one, %15, %29 : vector<8x16xf32>
      %c1024_i32 = arith.constant 1024 : i32
      %31 = vector.broadcast %c1024_i32 : i32 to vector<8x16xi32>
      %32 = arith.select %30, %28, %31 : vector<8x16xi1>, vector<8x16xi32>
      %cst_15 = arith.constant 1.000000e+03 : f32
      %33 = vector.broadcast %cst_15 : f32 to vector<8x16xf32>
      %34 = arith.mulf %18, %33 : vector<8x16xf32>
      %35 = arith.fptosi %34 : vector<8x16xf32> to vector<8x16xi32>
      %c1_i32_16 = arith.constant 1 : i32
      %36 = vector.broadcast %c1_i32_16 : i32 to vector<8x16xi32>
      %37 = arith.subi %35, %36 : vector<8x16xi32>
      %c0_i32_17 = arith.constant 0 : i32
      %38 = vector.broadcast %c0_i32_17 : i32 to vector<8x16xi32>
      %39 = arith.cmpi slt, %37, %38 : vector<8x16xi32>
      %c1000_i32_18 = arith.constant 1000 : i32
      %40 = vector.broadcast %c1000_i32_18 : i32 to vector<8x16xi32>
      %41 = arith.addi %37, %40 : vector<8x16xi32>
      %42 = arith.select %39, %41, %37 : vector<8x16xi1>, vector<8x16xi32>
      %cst_19 = arith.constant 0.000000e+00 : f32
      %43 = vector.broadcast %cst_19 : f32 to vector<8x16xf32>
      %44 = arith.cmpf one, %18, %43 : vector<8x16xf32>
      %c1024_i32_20 = arith.constant 1024 : i32
      %45 = vector.broadcast %c1024_i32_20 : i32 to vector<8x16xi32>
      %46 = arith.select %44, %42, %45 : vector<8x16xi1>, vector<8x16xi32>
      %c0_i32_21 = arith.constant 0 : i32
      %47 = vector.broadcast %c0_i32_21 : i32 to vector<8x1024xi32>
      %48 = vector.extract_strided_slice %32 {offsets = [0, 0], sizes = [8, 1], strides = [1, 1]} : vector<8x16xi32> to vector<8x1xi32>
      %49 = vector.broadcast %48 : vector<8x1xi32> to vector<8x1024xi32>
      %50 = arith.cmpi eq, %49, %0 : vector<8x1024xi32>
      %c0_i32_22 = arith.constant 0 : i32
      %51 = vector.broadcast %c0_i32_22 : i32 to vector<8x1024xi32>
      %52 = arith.select %50, %51, %47 : vector<8x1024xi1>, vector<8x1024xi32>
      %53 = vector.extract_strided_slice %46 {offsets = [0, 0], sizes = [8, 1], strides = [1, 1]} : vector<8x16xi32> to vector<8x1xi32>
      %54 = vector.broadcast %53 : vector<8x1xi32> to vector<8x1024xi32>
      %55 = arith.cmpi eq, %54, %0 : vector<8x1024xi32>
      %c0_i32_23 = arith.constant 0 : i32
      %56 = vector.broadcast %c0_i32_23 : i32 to vector<8x1024xi32>
      %57 = arith.select %55, %56, %47 : vector<8x1024xi1>, vector<8x1024xi32>
      %58 = vector.extract_strided_slice %32 {offsets = [0, 1], sizes = [8, 1], strides = [1, 1]} : vector<8x16xi32> to vector<8x1xi32>
      %59 = vector.broadcast %58 : vector<8x1xi32> to vector<8x1024xi32>
      %60 = arith.cmpi eq, %59, %0 : vector<8x1024xi32>
      %c1_i32_24 = arith.constant 1 : i32
      %61 = vector.broadcast %c1_i32_24 : i32 to vector<8x1024xi32>
      %62 = arith.select %60, %61, %52 : vector<8x1024xi1>, vector<8x1024xi32>
      %63 = vector.extract_strided_slice %46 {offsets = [0, 1], sizes = [8, 1], strides = [1, 1]} : vector<8x16xi32> to vector<8x1xi32>
      %64 = vector.broadcast %63 : vector<8x1xi32> to vector<8x1024xi32>
      %65 = arith.cmpi eq, %64, %0 : vector<8x1024xi32>
      %c1_i32_25 = arith.constant 1 : i32
      %66 = vector.broadcast %c1_i32_25 : i32 to vector<8x1024xi32>
      %67 = arith.select %65, %66, %57 : vector<8x1024xi1>, vector<8x1024xi32>
      %68 = vector.extract_strided_slice %32 {offsets = [0, 2], sizes = [8, 1], strides = [1, 1]} : vector<8x16xi32> to vector<8x1xi32>
      %69 = vector.broadcast %68 : vector<8x1xi32> to vector<8x1024xi32>
      %70 = arith.cmpi eq, %69, %0 : vector<8x1024xi32>
      %c2_i32_26 = arith.constant 2 : i32
      %71 = vector.broadcast %c2_i32_26 : i32 to vector<8x1024xi32>
      %72 = arith.select %70, %71, %62 : vector<8x1024xi1>, vector<8x1024xi32>
      %73 = vector.extract_strided_slice %46 {offsets = [0, 2], sizes = [8, 1], strides = [1, 1]} : vector<8x16xi32> to vector<8x1xi32>
      %74 = vector.broadcast %73 : vector<8x1xi32> to vector<8x1024xi32>
      %75 = arith.cmpi eq, %74, %0 : vector<8x1024xi32>
      %c2_i32_27 = arith.constant 2 : i32
      %76 = vector.broadcast %c2_i32_27 : i32 to vector<8x1024xi32>
      %77 = arith.select %75, %76, %67 : vector<8x1024xi1>, vector<8x1024xi32>
      %78 = vector.extract_strided_slice %32 {offsets = [0, 3], sizes = [8, 1], strides = [1, 1]} : vector<8x16xi32> to vector<8x1xi32>
      %79 = vector.broadcast %78 : vector<8x1xi32> to vector<8x1024xi32>
      %80 = arith.cmpi eq, %79, %0 : vector<8x1024xi32>
      %c3_i32 = arith.constant 3 : i32
      %81 = vector.broadcast %c3_i32 : i32 to vector<8x1024xi32>
      %82 = arith.select %80, %81, %72 : vector<8x1024xi1>, vector<8x1024xi32>
      %83 = vector.extract_strided_slice %46 {offsets = [0, 3], sizes = [8, 1], strides = [1, 1]} : vector<8x16xi32> to vector<8x1xi32>
      %84 = vector.broadcast %83 : vector<8x1xi32> to vector<8x1024xi32>
      %85 = arith.cmpi eq, %84, %0 : vector<8x1024xi32>
      %c3_i32_28 = arith.constant 3 : i32
      %86 = vector.broadcast %c3_i32_28 : i32 to vector<8x1024xi32>
      %87 = arith.select %85, %86, %77 : vector<8x1024xi1>, vector<8x1024xi32>
      %88 = vector.extract_strided_slice %32 {offsets = [0, 4], sizes = [8, 1], strides = [1, 1]} : vector<8x16xi32> to vector<8x1xi32>
      %89 = vector.broadcast %88 : vector<8x1xi32> to vector<8x1024xi32>
      %90 = arith.cmpi eq, %89, %0 : vector<8x1024xi32>
      %c4_i32 = arith.constant 4 : i32
      %91 = vector.broadcast %c4_i32 : i32 to vector<8x1024xi32>
      %92 = arith.select %90, %91, %82 : vector<8x1024xi1>, vector<8x1024xi32>
      %93 = vector.extract_strided_slice %46 {offsets = [0, 4], sizes = [8, 1], strides = [1, 1]} : vector<8x16xi32> to vector<8x1xi32>
      %94 = vector.broadcast %93 : vector<8x1xi32> to vector<8x1024xi32>
      %95 = arith.cmpi eq, %94, %0 : vector<8x1024xi32>
      %c4_i32_29 = arith.constant 4 : i32
      %96 = vector.broadcast %c4_i32_29 : i32 to vector<8x1024xi32>
      %97 = arith.select %95, %96, %87 : vector<8x1024xi1>, vector<8x1024xi32>
      %98 = vector.extract_strided_slice %32 {offsets = [0, 5], sizes = [8, 1], strides = [1, 1]} : vector<8x16xi32> to vector<8x1xi32>
      %99 = vector.broadcast %98 : vector<8x1xi32> to vector<8x1024xi32>
      %100 = arith.cmpi eq, %99, %0 : vector<8x1024xi32>
      %c5_i32 = arith.constant 5 : i32
      %101 = vector.broadcast %c5_i32 : i32 to vector<8x1024xi32>
      %102 = arith.select %100, %101, %92 : vector<8x1024xi1>, vector<8x1024xi32>
      %103 = vector.extract_strided_slice %46 {offsets = [0, 5], sizes = [8, 1], strides = [1, 1]} : vector<8x16xi32> to vector<8x1xi32>
      %104 = vector.broadcast %103 : vector<8x1xi32> to vector<8x1024xi32>
      %105 = arith.cmpi eq, %104, %0 : vector<8x1024xi32>
      %c5_i32_30 = arith.constant 5 : i32
      %106 = vector.broadcast %c5_i32_30 : i32 to vector<8x1024xi32>
      %107 = arith.select %105, %106, %97 : vector<8x1024xi1>, vector<8x1024xi32>
      %108 = vector.extract_strided_slice %32 {offsets = [0, 6], sizes = [8, 1], strides = [1, 1]} : vector<8x16xi32> to vector<8x1xi32>
      %109 = vector.broadcast %108 : vector<8x1xi32> to vector<8x1024xi32>
      %110 = arith.cmpi eq, %109, %0 : vector<8x1024xi32>
      %c6_i32 = arith.constant 6 : i32
      %111 = vector.broadcast %c6_i32 : i32 to vector<8x1024xi32>
      %112 = arith.select %110, %111, %102 : vector<8x1024xi1>, vector<8x1024xi32>
      %113 = vector.extract_strided_slice %46 {offsets = [0, 6], sizes = [8, 1], strides = [1, 1]} : vector<8x16xi32> to vector<8x1xi32>
      %114 = vector.broadcast %113 : vector<8x1xi32> to vector<8x1024xi32>
      %115 = arith.cmpi eq, %114, %0 : vector<8x1024xi32>
      %c6_i32_31 = arith.constant 6 : i32
      %116 = vector.broadcast %c6_i32_31 : i32 to vector<8x1024xi32>
      %117 = arith.select %115, %116, %107 : vector<8x1024xi1>, vector<8x1024xi32>
      %118 = vector.extract_strided_slice %32 {offsets = [0, 7], sizes = [8, 1], strides = [1, 1]} : vector<8x16xi32> to vector<8x1xi32>
      %119 = vector.broadcast %118 : vector<8x1xi32> to vector<8x1024xi32>
      %120 = arith.cmpi eq, %119, %0 : vector<8x1024xi32>
      %c7_i32 = arith.constant 7 : i32
      %121 = vector.broadcast %c7_i32 : i32 to vector<8x1024xi32>
      %122 = arith.select %120, %121, %112 : vector<8x1024xi1>, vector<8x1024xi32>
      %123 = vector.extract_strided_slice %46 {offsets = [0, 7], sizes = [8, 1], strides = [1, 1]} : vector<8x16xi32> to vector<8x1xi32>
      %124 = vector.broadcast %123 : vector<8x1xi32> to vector<8x1024xi32>
      %125 = arith.cmpi eq, %124, %0 : vector<8x1024xi32>
      %c7_i32_32 = arith.constant 7 : i32
      %126 = vector.broadcast %c7_i32_32 : i32 to vector<8x1024xi32>
      %127 = arith.select %125, %126, %117 : vector<8x1024xi1>, vector<8x1024xi32>
      %128 = vector.extract_strided_slice %32 {offsets = [0, 8], sizes = [8, 1], strides = [1, 1]} : vector<8x16xi32> to vector<8x1xi32>
      %129 = vector.broadcast %128 : vector<8x1xi32> to vector<8x1024xi32>
      %130 = arith.cmpi eq, %129, %0 : vector<8x1024xi32>
      %c8_i32_33 = arith.constant 8 : i32
      %131 = vector.broadcast %c8_i32_33 : i32 to vector<8x1024xi32>
      %132 = arith.select %130, %131, %122 : vector<8x1024xi1>, vector<8x1024xi32>
      %133 = vector.extract_strided_slice %46 {offsets = [0, 8], sizes = [8, 1], strides = [1, 1]} : vector<8x16xi32> to vector<8x1xi32>
      %134 = vector.broadcast %133 : vector<8x1xi32> to vector<8x1024xi32>
      %135 = arith.cmpi eq, %134, %0 : vector<8x1024xi32>
      %c8_i32_34 = arith.constant 8 : i32
      %136 = vector.broadcast %c8_i32_34 : i32 to vector<8x1024xi32>
      %137 = arith.select %135, %136, %127 : vector<8x1024xi1>, vector<8x1024xi32>
      %138 = vector.extract_strided_slice %32 {offsets = [0, 9], sizes = [8, 1], strides = [1, 1]} : vector<8x16xi32> to vector<8x1xi32>
      %139 = vector.broadcast %138 : vector<8x1xi32> to vector<8x1024xi32>
      %140 = arith.cmpi eq, %139, %0 : vector<8x1024xi32>
      %c9_i32 = arith.constant 9 : i32
      %141 = vector.broadcast %c9_i32 : i32 to vector<8x1024xi32>
      %142 = arith.select %140, %141, %132 : vector<8x1024xi1>, vector<8x1024xi32>
      %143 = vector.extract_strided_slice %46 {offsets = [0, 9], sizes = [8, 1], strides = [1, 1]} : vector<8x16xi32> to vector<8x1xi32>
      %144 = vector.broadcast %143 : vector<8x1xi32> to vector<8x1024xi32>
      %145 = arith.cmpi eq, %144, %0 : vector<8x1024xi32>
      %c9_i32_35 = arith.constant 9 : i32
      %146 = vector.broadcast %c9_i32_35 : i32 to vector<8x1024xi32>
      %147 = arith.select %145, %146, %137 : vector<8x1024xi1>, vector<8x1024xi32>
      %148 = vector.extract_strided_slice %32 {offsets = [0, 10], sizes = [8, 1], strides = [1, 1]} : vector<8x16xi32> to vector<8x1xi32>
      %149 = vector.broadcast %148 : vector<8x1xi32> to vector<8x1024xi32>
      %150 = arith.cmpi eq, %149, %0 : vector<8x1024xi32>
      %c10_i32 = arith.constant 10 : i32
      %151 = vector.broadcast %c10_i32 : i32 to vector<8x1024xi32>
      %152 = arith.select %150, %151, %142 : vector<8x1024xi1>, vector<8x1024xi32>
      %153 = vector.extract_strided_slice %46 {offsets = [0, 10], sizes = [8, 1], strides = [1, 1]} : vector<8x16xi32> to vector<8x1xi32>
      %154 = vector.broadcast %153 : vector<8x1xi32> to vector<8x1024xi32>
      %155 = arith.cmpi eq, %154, %0 : vector<8x1024xi32>
      %c10_i32_36 = arith.constant 10 : i32
      %156 = vector.broadcast %c10_i32_36 : i32 to vector<8x1024xi32>
      %157 = arith.select %155, %156, %147 : vector<8x1024xi1>, vector<8x1024xi32>
      %158 = vector.extract_strided_slice %32 {offsets = [0, 11], sizes = [8, 1], strides = [1, 1]} : vector<8x16xi32> to vector<8x1xi32>
      %159 = vector.broadcast %158 : vector<8x1xi32> to vector<8x1024xi32>
      %160 = arith.cmpi eq, %159, %0 : vector<8x1024xi32>
      %c11_i32 = arith.constant 11 : i32
      %161 = vector.broadcast %c11_i32 : i32 to vector<8x1024xi32>
      %162 = arith.select %160, %161, %152 : vector<8x1024xi1>, vector<8x1024xi32>
      %163 = vector.extract_strided_slice %46 {offsets = [0, 11], sizes = [8, 1], strides = [1, 1]} : vector<8x16xi32> to vector<8x1xi32>
      %164 = vector.broadcast %163 : vector<8x1xi32> to vector<8x1024xi32>
      %165 = arith.cmpi eq, %164, %0 : vector<8x1024xi32>
      %c11_i32_37 = arith.constant 11 : i32
      %166 = vector.broadcast %c11_i32_37 : i32 to vector<8x1024xi32>
      %167 = arith.select %165, %166, %157 : vector<8x1024xi1>, vector<8x1024xi32>
      %168 = vector.extract_strided_slice %32 {offsets = [0, 12], sizes = [8, 1], strides = [1, 1]} : vector<8x16xi32> to vector<8x1xi32>
      %169 = vector.broadcast %168 : vector<8x1xi32> to vector<8x1024xi32>
      %170 = arith.cmpi eq, %169, %0 : vector<8x1024xi32>
      %c12_i32 = arith.constant 12 : i32
      %171 = vector.broadcast %c12_i32 : i32 to vector<8x1024xi32>
      %172 = arith.select %170, %171, %162 : vector<8x1024xi1>, vector<8x1024xi32>
      %173 = vector.extract_strided_slice %46 {offsets = [0, 12], sizes = [8, 1], strides = [1, 1]} : vector<8x16xi32> to vector<8x1xi32>
      %174 = vector.broadcast %173 : vector<8x1xi32> to vector<8x1024xi32>
      %175 = arith.cmpi eq, %174, %0 : vector<8x1024xi32>
      %c12_i32_38 = arith.constant 12 : i32
      %176 = vector.broadcast %c12_i32_38 : i32 to vector<8x1024xi32>
      %177 = arith.select %175, %176, %167 : vector<8x1024xi1>, vector<8x1024xi32>
      %178 = vector.extract_strided_slice %32 {offsets = [0, 13], sizes = [8, 1], strides = [1, 1]} : vector<8x16xi32> to vector<8x1xi32>
      %179 = vector.broadcast %178 : vector<8x1xi32> to vector<8x1024xi32>
      %180 = arith.cmpi eq, %179, %0 : vector<8x1024xi32>
      %c13_i32 = arith.constant 13 : i32
      %181 = vector.broadcast %c13_i32 : i32 to vector<8x1024xi32>
      %182 = arith.select %180, %181, %172 : vector<8x1024xi1>, vector<8x1024xi32>
      %183 = vector.extract_strided_slice %46 {offsets = [0, 13], sizes = [8, 1], strides = [1, 1]} : vector<8x16xi32> to vector<8x1xi32>
      %184 = vector.broadcast %183 : vector<8x1xi32> to vector<8x1024xi32>
      %185 = arith.cmpi eq, %184, %0 : vector<8x1024xi32>
      %c13_i32_39 = arith.constant 13 : i32
      %186 = vector.broadcast %c13_i32_39 : i32 to vector<8x1024xi32>
      %187 = arith.select %185, %186, %177 : vector<8x1024xi1>, vector<8x1024xi32>
      %188 = vector.extract_strided_slice %32 {offsets = [0, 14], sizes = [8, 1], strides = [1, 1]} : vector<8x16xi32> to vector<8x1xi32>
      %189 = vector.broadcast %188 : vector<8x1xi32> to vector<8x1024xi32>
      %190 = arith.cmpi eq, %189, %0 : vector<8x1024xi32>
      %c14_i32 = arith.constant 14 : i32
      %191 = vector.broadcast %c14_i32 : i32 to vector<8x1024xi32>
      %192 = arith.select %190, %191, %182 : vector<8x1024xi1>, vector<8x1024xi32>
      %193 = vector.extract_strided_slice %46 {offsets = [0, 14], sizes = [8, 1], strides = [1, 1]} : vector<8x16xi32> to vector<8x1xi32>
      %194 = vector.broadcast %193 : vector<8x1xi32> to vector<8x1024xi32>
      %195 = arith.cmpi eq, %194, %0 : vector<8x1024xi32>
      %c14_i32_40 = arith.constant 14 : i32
      %196 = vector.broadcast %c14_i32_40 : i32 to vector<8x1024xi32>
      %197 = arith.select %195, %196, %187 : vector<8x1024xi1>, vector<8x1024xi32>
      %198 = vector.extract_strided_slice %32 {offsets = [0, 15], sizes = [8, 1], strides = [1, 1]} : vector<8x16xi32> to vector<8x1xi32>
      %199 = vector.broadcast %198 : vector<8x1xi32> to vector<8x1024xi32>
      %200 = arith.cmpi eq, %199, %0 : vector<8x1024xi32>
      %c15_i32 = arith.constant 15 : i32
      %201 = vector.broadcast %c15_i32 : i32 to vector<8x1024xi32>
      %202 = arith.select %200, %201, %192 : vector<8x1024xi1>, vector<8x1024xi32>
      %203 = vector.extract_strided_slice %46 {offsets = [0, 15], sizes = [8, 1], strides = [1, 1]} : vector<8x16xi32> to vector<8x1xi32>
      %204 = vector.broadcast %203 : vector<8x1xi32> to vector<8x1024xi32>
      %205 = arith.cmpi eq, %204, %0 : vector<8x1024xi32>
      %c15_i32_41 = arith.constant 15 : i32
      %206 = vector.broadcast %c15_i32_41 : i32 to vector<8x1024xi32>
      %207 = arith.select %205, %206, %197 : vector<8x1024xi1>, vector<8x1024xi32>
      %208 = arith.subi %202, %207 : vector<8x1024xi32>
      %209 = arith.sitofp %208 : vector<8x1024xi32> to vector<8x1024xf32>
      %210 = arith.mulf %209, %209 : vector<8x1024xf32>
      %211 = vector.extract_strided_slice %210 {offsets = [0, 0], sizes = [8, 128], strides = [1, 1]} : vector<8x1024xf32> to vector<8x128xf32>
      %212 = arith.addf %arg6, %211 : vector<8x128xf32>
      %213 = vector.extract_strided_slice %210 {offsets = [0, 128], sizes = [8, 128], strides = [1, 1]} : vector<8x1024xf32> to vector<8x128xf32>
      %214 = arith.addf %212, %213 : vector<8x128xf32>
      %215 = vector.extract_strided_slice %210 {offsets = [0, 256], sizes = [8, 128], strides = [1, 1]} : vector<8x1024xf32> to vector<8x128xf32>
      %216 = arith.addf %214, %215 : vector<8x128xf32>
      %217 = vector.extract_strided_slice %210 {offsets = [0, 384], sizes = [8, 128], strides = [1, 1]} : vector<8x1024xf32> to vector<8x128xf32>
      %218 = arith.addf %216, %217 : vector<8x128xf32>
      %219 = vector.extract_strided_slice %210 {offsets = [0, 512], sizes = [8, 128], strides = [1, 1]} : vector<8x1024xf32> to vector<8x128xf32>
      %220 = arith.addf %218, %219 : vector<8x128xf32>
      %221 = vector.extract_strided_slice %210 {offsets = [0, 640], sizes = [8, 128], strides = [1, 1]} : vector<8x1024xf32> to vector<8x128xf32>
      %222 = arith.addf %220, %221 : vector<8x128xf32>
      %223 = vector.extract_strided_slice %210 {offsets = [0, 768], sizes = [8, 128], strides = [1, 1]} : vector<8x1024xf32> to vector<8x128xf32>
      %224 = arith.addf %222, %223 : vector<8x128xf32>
      %225 = vector.extract_strided_slice %210 {offsets = [0, 896], sizes = [8, 128], strides = [1, 1]} : vector<8x1024xf32> to vector<8x128xf32>
      %226 = arith.addf %224, %225 : vector<8x128xf32>
      scf.yield %226 : vector<8x128xf32>
    }
    %c2_i32_0 = arith.constant 2 : i32
    %4 = vector.shape_cast %3 : vector<8x128xf32> to vector<1x8x128xf32>
    %cst_1 = arith.constant dense<0.000000e+00> : vector<1xf32>
    %5 = vector.multi_reduction <add>, %4, %cst_1 [1, 2] : vector<1x8x128xf32> to vector<1xf32>
    %6 = vector.shape_cast %5 : vector<1xf32> to vector<1x1x1xf32>
    %7 = vector.extract %6[0, 0, 0] : f32 from vector<1x1x1xf32>
    %8 = vector.broadcast %7 : f32 to vector<1x1xf32>
    %9 = vector.shape_cast %8 : vector<1x1xf32> to vector<1x1x1x1xf32>
    %c0 = arith.constant 0 : index
    %c0_2 = arith.constant 0 : index
    %c0_3 = arith.constant 0 : index
    %c0_4 = arith.constant 0 : index
    %10 = vector.load %arg4[%c0, %c0_2, %c0_3, %c0_4] : memref<1x1x1x1xf32, #tpu.memory_space<vmem>>, vector<1x1x1x1xf32>
    tpu.vector_store %arg4[%c0, %c0_2, %c0_3, %c0_4], %9 {strides = array<i32>} : memref<1x1x1x1xf32, #tpu.memory_space<vmem>>, vector<1x1x1x1xf32>,
    return
  }
  func.func @transform_0(%arg0: i32, %arg1: i32) -> (i32, i32, i32, i32) {
    %c0_i32 = arith.constant 0 : i32
    %c0_i32_0 = arith.constant 0 : i32
    %c0_i32_1 = arith.constant 0 : i32
    return %arg0, %c0_i32, %arg1, %c0_i32_0 : i32, i32, i32, i32
  }
  func.func @transform_1(%arg0: i32, %arg1: i32) -> (i32, i32, i32, i32) {
    %c0_i32 = arith.constant 0 : i32
    %c0_i32_0 = arith.constant 0 : i32
    %c0_i32_1 = arith.constant 0 : i32
    return %arg0, %c0_i32, %arg1, %c0_i32_0 : i32, i32, i32, i32
  }
  func.func @transform_2(%arg0: i32, %arg1: i32) -> (i32, i32, i32, i32) {
    %c0_i32 = arith.constant 0 : i32
    %c0_i32_0 = arith.constant 0 : i32
    %c0_i32_1 = arith.constant 0 : i32
    return %arg0, %arg1, %c0_i32, %c0_i32_0 : i32, i32, i32, i32
  }
}

</mosaic_0001>

<bundles_post_ra>
// kernel: tpu_custom_call.1
= control target key start
LH: loop header
LB: loop body
LE: loop exit
PB: predicated region body
PF: predicated region fallthrough
CT: control target
= control target key end

     0   :  { %7 = vsyncpa [#allocation3], 0  ;;  %s2285_s0 = inlined_call_operand.hbm [shape: f32[2,4,16,16], index: 0, kind: input, shape index: {}]   ;;  %s2286_s1 = inlined_call_operand.hbm [shape: f32[2,4,16,16], index: 1, kind: input, shape index: {}]   ;;  %s2287_s2 = inlined_call_operand.vmem [shape: f32[2,1,1,1], index: 2, kind: output, shape index: {}]  }
   0x1   :  { %9 = vsyncpa [#allocation3 + $0x1], 0 }
   0x2   :  { %10 = vsyncpa [#allocation5], 0 }
   0x3   :  { %12 = vsyncpa [#allocation5 + $0x1], 0  ;;  %s1310_s9 = smov 0   ;;  %s1312_s10 = smov 0  }
   0x4   :  { %s1314_s11 = smov 0   ;;  %s1316_s12 = smov 0  }
   0x5   :  { %s1318_s13 = smov 0   ;;  %s1320_s14 = smov 0  }
   0x6 LB: > { %s999_s15 = sadd.s32 4294967295, %s1265_s14   ;;  %s30_s16 = sadd.s32 1, %s1261_s13  ;;  %s1265_s14 = sphi %s1320_s14, %s18_s14   ;;  %s1261_s13 = sphi %s1318_s13, %s2317_s13   ;;  %s1257_s12 = sphi %s1316_s12, %s2316_s12   ;;  %s1253_s11 = sphi %s1314_s11, %s2315_s11   ;;  %s1249_s10 = sphi %s1312_s10, %s2314_s10   ;;  %s1245_s9 = sphi %s1310_s9, %s2313_s9  }
   0x7   : > { %p32_p0 = scmp.ge.s32.totalorder %s30_s16, 2  ;;  %s39_s17 = sadd.s32 1, %s1253_s11 }
   0x8   : > { %p46_p1 = scmp.ne.s32.totalorder %s1253_s11, %s1249_s10  ;;  %p47_p2 = scmp.eq.s32.totalorder %s1265_s14, 0 }
   0x9   : > { %s2319_s16 = smov (%p32_p0, %s30_s16), 0  ;;  %p52_p4 = scmp.ne.s32.totalorder %s1249_s10, %s1245_s9 }
   0xa   : > { %p1346_p3 = por %p47_p2, %p46_p1  ;;  %s34_s19 = ssub.s32 %s1261_s13, %s2319_s16 }
   0xb   : > { %p53_p5 = scmp.eq.s32.totalorder %s999_s15, 0  ;;  %p37_p6 = scmp.eq.s32.totalorder %s34_s19, 0 }
   0xc   : > { %p1036_p8 = scmp.lt.s32.totalorder %s1265_s14, 2  ;;  %s1362_s22 = sand.u32 1, %s1253_s11  }
   0xd   : > { %p1353_p7 = por %p53_p5, %p52_p4  ;;  %s1017_s23 = sshll.u32 %s1261_s13, 10 }
   0xe   : > { %s1359_s21 = scalar_select %p37_p6, %s1253_s11, %s39_s17  }
   0xf   : > { %s2290_s20 = scalar_select %p1353_p7, 1, 0 }
  0x10   : > { %s1003_s24 = sshll.u32 %s1362_s22, 4  ;;  %s1371_s27 = scalar_lea.hbm %s2285_s0, %s1017_s23 }
  0x11   : > { %s136_s28 = scalar_lea.vmem [#allocation2], %s1003_s24  ;;  %p1377_p9 = pnand %p1036_p8, %p1346_p3 }
  0x12   : > { %s145_s29 = sshll.u32 %s136_s28, 4  ;;  %s133_s3 = scalar_lea.sflag [#allocation3], %s1362_s22  ;;  %s1381_s29 = int_to_ptr.vmem [resolvable:$true] %s145_s29 }
  0x13   : > { %s1143_s4 = scalar_lea.hbm %s1371_s27, 256  ;;  %p1145_p11 = pneg %p1377_p9 }
  0x14   : > { %p1144_p10 = scmp.ne.s32.totalorder %s1371_s27, %s1143_s4  ;;  %s1148_s7 = scalar_lea.hbm %s2285_s0, 2048 }
  0x15   : > { %p1149_p0 = scmp.lt.u32.totalorder %s1371_s27, %s2285_s0  ;;  %p1150_p1 = scmp.lt.u32.totalorder %s1148_s7, %s1143_s4 }
  0x16   : > { %p1146_p12 = pnand %p1145_p11, %p1144_p10  ;;  %p1152_p3 = scmp.lt.u32.totalorder %s1143_s4, %s1371_s27 }
  0x17   : > { %p1151_p2 = por %p1150_p1, %p1149_p0 }
  0x18   : > { %p1147_p13 = pneg %p1146_p12 }
  0x19   : > { %p1153_p4 = por %p1152_p3, %p1151_p2 }
  0x1b   : > { %p1154_p5 = pnand %p1153_p4, %p1147_p13 }
  0x1d   : > { %1157 = shalt.err (!%p1154_p5)
}
  0x1e   : > { %s1158_s15 = scalar_lea.vmem %s1381_s29, 256  ;;  %s1275_s17 = smov [#allocation2]  }
  0x1f   : > { %p1159_p6 = scmp.ne.s32.totalorder %s1381_s29, %s1158_s15  ;;  %s1163_s18 = sshll.u32 %s1275_s17, 4  ;;  %s1164_s18 = int_to_ptr.vmem [resolvable:$false] %s1163_s18 }
  0x20   : > { %s1165_s19 = scalar_lea.vmem %s1164_s18, 512  ;;  %p1166_p12 = scmp.lt.s32.totalorder %s1381_s29, %s1164_s18 }
  0x21   : > { %p1161_p8 = pnand %p1159_p6, %p1145_p11  ;;  %p1167_p0 = scmp.lt.s32.totalorder %s1165_s19, %s1158_s15 }
  0x23   : > { %p1162_p10 = pneg %p1161_p8  ;;  %p1168_p1 = por %p1167_p0, %p1166_p12 }
  0x25   : > { %p1169_p2 = pnand %p1168_p1, %p1162_p10 }
  0x27   : > { %1172 = shalt.err (!%p1169_p2)
}
  0x28   : > { %s1276_s25 = smov 128   ;;  %s1277_s26 = smov 8  }
  0x29   : > { %1032 = dma.hbm_to_vmem [thread:$0]  (!%p1377_p9), %s1371_s27, 256, %s1381_s29, %s133_s3, %s1276_s25, %s1276_s25, %s1277_s26  }
  0x2a   : > { %p1009_p13 = scmp.ge.s32.totalorder %s1265_s14, 1  ;;  %p176_p3 = scmp.lt.s32.totalorder %s1265_s14, 3 }
  0x2b   : > { %s1425_s6 = scalar_lea.hbm %s2286_s1, %s1017_s23  ;;  %s159_s7 = scalar_lea.vmem [#allocation4], %s1003_s24 }
  0x2c   : > { %p1416_p4 = pnand %p1009_p13, %p176_p3  ;;  %s168_s8 = sshll.u32 %s159_s7, 4  ;;  %s1429_s8 = int_to_ptr.vmem [resolvable:$true] %s168_s8 }
  0x2d   : > { %s156_s27 = scalar_lea.sflag [#allocation5], %s1362_s22  ;;  %s1173_s29 = scalar_lea.hbm %s1425_s6, 256 }
  0x2e   : > { %p1174_p5 = scmp.ne.s32.totalorder %s1425_s6, %s1173_s29  ;;  %s1178_s23 = scalar_lea.hbm %s2286_s1, 2048 }
  0x2f   : > { %p1179_p10 = scmp.lt.u32.totalorder %s1425_s6, %s2286_s1  ;;  %p1180_p12 = scmp.lt.u32.totalorder %s1178_s23, %s1173_s29 }
  0x30   : > { %p1176_p6 = pnand %p1174_p5, %p1145_p11  ;;  %p1182_p1 = scmp.lt.u32.totalorder %s1173_s29, %s1425_s6 }
  0x31   : > { %p1181_p0 = por %p1180_p12, %p1179_p10 }
  0x32   : > { %p1177_p8 = pneg %p1176_p6 }
  0x33   : > { %p1183_p2 = por %p1182_p1, %p1181_p0 }
  0x35   : > { %p1184_p13 = pnand %p1183_p2, %p1177_p8 }
  0x37   : > { %1187 = shalt.err (!%p1184_p13)
}
  0x38   : > { %s1188_s24 = scalar_lea.vmem %s1429_s8, 256  ;;  %s1278_s18 = smov [#allocation4]  }
  0x39   : > { %p1189_p3 = scmp.ne.s32.totalorder %s1429_s8, %s1188_s24  ;;  %s1193_s19 = sshll.u32 %s1278_s18, 4  ;;  %s1194_s19 = int_to_ptr.vmem [resolvable:$false] %s1193_s19 }
  0x3a   : > { %s1195_s4 = scalar_lea.vmem %s1194_s19, 512  ;;  %p1196_p7 = scmp.lt.s32.totalorder %s1429_s8, %s1194_s19 }
  0x3b   : > { %p1191_p5 = pnand %p1189_p3, %p1145_p11  ;;  %p1197_p10 = scmp.lt.s32.totalorder %s1195_s4, %s1188_s24 }
  0x3d   : > { %p1192_p6 = pneg %p1191_p5  ;;  %p1198_p12 = por %p1197_p10, %p1196_p7 }
  0x3f   : > { %p1199_p0 = pnand %p1198_p12, %p1192_p6 }
  0x41   : > { %1202 = shalt.err (!%p1199_p0)
}
  0x42   : > { %1035 = dma.hbm_to_vmem [thread:$0]  (!%p1377_p9), %s1425_s6, 256, %s1429_s8, %s156_s27, %s1276_s25, %s1276_s25, %s1277_s26  }
  0x43   : > { %180 = sbr.rel (%p1416_p4) target bundleno = 573 (0x23d), region = 28  ;;  %s182_s5 = sand.u32 (!%p1416_p4), 1, %s1249_s10  }
  0x44   : > { %s1010_s7 = sshll.u32 (!%p1416_p4), %s182_s5, 4  ;;  %s183_s29 = scalar_lea.sflag (!%p1416_p4), [#allocation3], %s182_s5 }
  0x45   : > { %s1463_s3 = scalar_lea.vmem (!%p1416_p4), [#allocation2], %s1010_s7  ;;  %p2293_p7 = scmp.ne.s32.totalorder (!%p1416_p4), %s2290_s20, 0 }
  0x4a   : > { %1236 = dma.done.wait (%p2293_p7), %s183_s29, 256  }
  0x4b   : > { %1238 = vsyncadd (%p2293_p7), %s183_s29, 4294967040  ;;  %s192_s22 = scalar_lea.sflag [#allocation5], %s182_s5  ;;  %s1469_s30 = scalar_lea.vmem [#allocation4], %s1010_s7 }
  0x4c   : > { %1240 = dma.done.wait (%p2293_p7), %s192_s22, 256  }
  0x4d   : > { %1242 = vsyncadd (%p2293_p7), %s192_s22, 4294967040  ;;  %p224_p9 = scmp.lt.s32.totalorder %s1257_s12, 1  ;;  %v230_v0 = vlaneseq  ;;  %v1506_v9 = vmov 0.0   ;;  %s1508_s20 = smov 0  }
  0x4f   : > { %s2321_s12 = smov (!%p224_p9, %s1257_s12), 1  ;;  %v1479_v1 = vand.u32 127, %v230_v0 }
  0x50   : > { %s229_s28 = scalar_lea.vmem %s2287_s2, %s2321_s12 }
  0x51   : > { %v1486_v2 = vadd.s32 128, %v1479_v1  ;;  %v1489_v3 = vadd.s32 256, %v1479_v1  ;;  %v1492_v4 = vadd.s32 384, %v1479_v1  ;;  %v1495_v5 = vadd.s32 512, %v1479_v1 }
  0x52   : > { %v1498_v6 = vadd.s32 640, %v1479_v1  ;;  %v1501_v7 = vadd.s32 768, %v1479_v1  ;;  %v1504_v8 = vadd.s32 896, %v1479_v1 }
  0x53 LB: >> { %v1279_v10 = vmov 2   ;;  %v1280_v11 = vmov 1   ;;  %s1012_s6 = sshll.u32 %s1273_s20, 3  ;;  %v1281_v28 = vmov 3   ;;  %v1282_v29 = vmov 4   ;;  %s244_s20 = sadd.s32 1, %s1273_s20   ;;  %s1273_s20 = sphi %s1508_s20, %s244_s20   ;;  %v1269_v9 = vphi %v1506_v9, %v2312_v9  }
  0x54   : >> { %1120 = vset.pattern.permute.xlu1 %v1279_v10  ;;  %1119 = vset.pattern.permute.xlu0 %v1280_v11  ;;  %s247_s8 = scalar_lea.vmem %s1463_s3, %s1012_s6 [#allocation2]  ;;  %s249_s27 = scalar_lea.vmem %s1469_s30, %s1012_s6 [#allocation4]  ;;  %v1283_v30 = vmov 5   ;;  %v1284_v31 = vmov 6   ;;  %v1285_v32 = vmov 7   ;;  %v1286_v33 = vmov 9  }
  0x55   : >> { %v248_v12 = vld [vmem:[%s247_s8] sm:$0xff]  ;;  %v1287_v34 = vmov 10   ;;  %v1288_v35 = vmov 8   ;;  %v1289_v36 = vmov 12   ;;  %v1290_v37 = vmov 13   ;;  %p241_p11 = scmp.ge.s32.totalorder %s244_s20, 2  }
  0x56   : >> { %v250_v13 = vld [vmem:[%s249_s27] sm:$0xff]  ;;  %v251_v14 = vmul.f32 1000.0, %v248_v12  ;;  %vm257_vm0 = vcmp.ne.f32.partialorder %v248_v12, 0.0  ;;  %v1291_v38 = vmov 15   ;;  %v1292_v39 = vmov 11  }
  0x57   : >> { %v259_v15 = vmul.f32 1000.0, %v250_v13  ;;  %vm265_vm3 = vcmp.ne.f32.partialorder %v250_v13, 0.0  ;;  %v1293_v40 = vmov 14   ;;  %v1294_v45 = vmov 0  }
  0x58   : >> { %v1019_v16 = vtrunc.f32 %v251_v14 }
  0x59   : >> { %v1021_v17 = vtrunc.f32 %v259_v15 }
  0x5a   : >> { %v1020_v18 = vcvt.f32.s32 %v1019_v16 }
  0x5b   : >> { %v1022_v19 = vcvt.f32.s32 %v1021_v17 }
  0x5c   : >> { %v1013_v20 = vadd.s32 4294967295, %v1020_v18 }
  0x5d   : >> { %v1014_v21 = vadd.s32 4294967295, %v1022_v19 }
  0x5e   : >> { %vm254_vm1 = vcmp.lt.s32.totalorder %v1013_v20, 0  ;;  %v255_v22 = vadd.s32 1000, %v1013_v20 }
  0x5f   : >> { %vm262_vm2 = vcmp.lt.s32.totalorder %v1014_v21, 0  ;;  %v263_v23 = vadd.s32 1000, %v1014_v21 }
  0x60   : >> { %v256_v24 = vsel %vm254_vm1, %v255_v22, %v1013_v20 }
  0x61   : >> { %v264_v25 = vsel %vm262_vm2, %v263_v23, %v1014_v21  ;;  %v258_v26 = vsel %vm257_vm0, %v256_v24, 1024 }
  0x62   : >> { %306 = vperm.xlu1 %1120, %v258_v26   ;;  %268 = vperm.xlu0 %1119, %v258_v26   ;;  %v266_v27 = vsel %vm265_vm3, %v264_v25, 1024 }
  0x66   : >> { %325 = vperm.xlu1 %1120, %v266_v27   ;;  %287 = vperm.xlu0 %1119, %v266_v27  }
  0x6a   : >> { %1122 = vset.pattern.permute.xlu1 %v1281_v28  ;;  %1121 = vset.pattern.permute.xlu0 %v1281_v28 }
  0x6b   : >> { %363 = vperm.xlu1 %1122, %v266_v27   ;;  %344 = vperm.xlu0 %1121, %v258_v26  }
  0x6f   : >> { %1123 = vset.pattern.permute.xlu1 %v1282_v29  ;;  %1124 = vset.pattern.permute.xlu0 %v1282_v29 }
  0x70   : >> { %382 = vperm.xlu1 %1123, %v258_v26   ;;  %401 = vperm.xlu0 %1124, %v266_v27  }
  0x74   : >> { %1125 = vset.pattern.permute.xlu1 %v1283_v30  ;;  %1126 = vset.pattern.permute.xlu0 %v1284_v31 }
  0x75   : >> { %420 = vperm.xlu1 %1125, %v258_v26   ;;  %458 = vperm.xlu0 %1126, %v258_v26  }
  0x79   : >> { %439 = vperm.xlu1 %1125, %v266_v27   ;;  %1129 = vset.pattern.permute.xlu0 %v1285_v32 }
  0x7a   : >> { %515 = vperm.xlu0 %1129, %v266_v27  }
  0x7d   : >> { %1127 = vset.pattern.permute.xlu1 %v1284_v31 }
  0x7e   : >> { %477 = vperm.xlu1 %1127, %v266_v27   ;;  %1131 = vset.pattern.permute.xlu0 %v1286_v33 }
  0x7f   : >> { %572 = vperm.xlu0 %1131, %v258_v26  }
  0x82   : >> { %1128 = vset.pattern.permute.xlu1 %v1285_v32 }
  0x83   : >> { %496 = vperm.xlu1 %1128, %v258_v26   ;;  %1134 = vset.pattern.permute.xlu0 %v1287_v34 }
  0x84   : >> { %629 = vperm.xlu0 %1134, %v266_v27  }
  0x87   : >> { %1130 = vset.pattern.permute.xlu1 %v1288_v35 }
  0x88   : >> { %534 = vperm.xlu1 %1130, %v258_v26   ;;  %1136 = vset.pattern.permute.xlu0 %v1289_v36 }
  0x89   : >> { %686 = vperm.xlu0 %1136, %v258_v26  }
  0x8c   : >> { %553 = vperm.xlu1 %1130, %v266_v27  }
  0x8d   : >> { %1139 = vset.pattern.permute.xlu0 %v1290_v37 }
  0x8e   : >> { %743 = vperm.xlu0 %1139, %v266_v27  }
  0x90   : >> { %1132 = vset.pattern.permute.xlu1 %v1286_v33 }
  0x91   : >> { %591 = vperm.xlu1 %1132, %v266_v27  }
  0x92   : >> { %1141 = vset.pattern.permute.xlu0 %v1291_v38 }
  0x93   : >> { %800 = vperm.xlu0 %1141, %v258_v26  }
  0x95   : >> { %1133 = vset.pattern.permute.xlu1 %v1287_v34 }
  0x96   : >> { %610 = vperm.xlu1 %1133, %v258_v26  }
  0x9a   : >> { %1135 = vset.pattern.permute.xlu1 %v1292_v39 }
  0x9b   : >> { %648 = vperm.xlu1 %1135, %v258_v26  }
  0x9f   : >> { %667 = vperm.xlu1 %1135, %v266_v27  }
  0xa3   : >> { %1137 = vset.pattern.permute.xlu1 %v1289_v36 }
  0xa4   : >> { %705 = vperm.xlu1 %1137, %v266_v27  }
  0xa8   : >> { %1138 = vset.pattern.permute.xlu1 %v1290_v37 }
  0xa9   : >> { %724 = vperm.xlu1 %1138, %v258_v26  }
  0xad   : >> { %1140 = vset.pattern.permute.xlu1 %v1293_v40 }
  0xae   : >> { %762 = vperm.xlu1 %1140, %v258_v26  }
  0xb2   : >> { %781 = vperm.xlu1 %1140, %v266_v27  }
  0xb6   : >> { %1142 = vset.pattern.permute.xlu1 %v1291_v38 }
  0xb7   : >> { %819 = vperm.xlu1 %1142, %v266_v27  }
  0xe1   : >> { %v1519_v41 = vpop.permute.xlu1 %306  ;;  %v269_v42 = vpop.permute.xlu0 %268 }
  0xe2   : >> { %vm270_vm4 = vcmp.eq.s32.totalorder %v269_v42, %v1479_v1  ;;  %vm271_vm5 = vcmp.eq.s32.totalorder %v269_v42, %v1486_v2  ;;  %vm272_vm6 = vcmp.eq.s32.totalorder %v269_v42, %v1489_v3  ;;  %vm273_vm7 = vcmp.eq.s32.totalorder %v269_v42, %v1492_v4 }
  0xe3   : >> { %vm274_vm8 = vcmp.eq.s32.totalorder %v269_v42, %v1495_v5  ;;  %vm275_vm9 = vcmp.eq.s32.totalorder %v269_v42, %v1498_v6  ;;  %vm276_vm10 = vcmp.eq.s32.totalorder %v269_v42, %v1501_v7  ;;  %vm277_vm11 = vcmp.eq.s32.totalorder %v269_v42, %v1504_v8 }
  0xe4   : >> { %v1531_v46 = vsel %vm270_vm4, 1, %v1294_v45  ;;  %v1533_v47 = vsel %vm271_vm5, 1, %v1294_v45  ;;  %v1535_v48 = vsel %vm272_vm6, 1, %v1294_v45  ;;  %v1537_v49 = vsel %vm273_vm7, 1, %v1294_v45 }
  0xe5   : >> { %v1521_v43 = vpop.permute.xlu1 %325  ;;  %v288_v44 = vpop.permute.xlu0 %287  ;;  %v1539_v50 = vsel %vm274_vm8, 1, %v1294_v45  ;;  %v1541_v51 = vsel %vm275_vm9, 1, %v1294_v45  ;;  %v1543_v53 = vsel %vm276_vm10, 1, %v1294_v45  ;;  %v1545_v54 = vsel %vm277_vm11, 1, %v1294_v45 }
  0xe6   : >> { %vm295_vm12 = vcmp.eq.s32.totalorder %v288_v44, %v1501_v7  ;;  %vm296_vm13 = vcmp.eq.s32.totalorder %v288_v44, %v1504_v8  ;;  %vm327_vm0 = vcmp.eq.s32.totalorder %v1521_v43, %v1479_v1  ;;  %vm328_vm1 = vcmp.eq.s32.totalorder %v1521_v43, %v1486_v2 }
  0xe7   : >> { %vm333_vm6 = vcmp.eq.s32.totalorder %v1521_v43, %v1501_v7  ;;  %vm334_vm7 = vcmp.eq.s32.totalorder %v1521_v43, %v1504_v8  ;;  %vm289_vm8 = vcmp.eq.s32.totalorder %v288_v44, %v1479_v1  ;;  %vm290_vm9 = vcmp.eq.s32.totalorder %v288_v44, %v1486_v2 }
  0xe8   : >> { %vm291_vm4 = vcmp.eq.s32.totalorder %v288_v44, %v1489_v3  ;;  %vm292_vm5 = vcmp.eq.s32.totalorder %v288_v44, %v1492_v4  ;;  %v303_v55 = vsel %vm295_vm12, 1, %v1294_v45  ;;  %v304_v56 = vsel %vm296_vm13, 1, %v1294_v45 }
  0xe9   : >> { %vm314_vm15 = vcmp.eq.s32.totalorder %v1519_v41, %v1501_v7  ;;  %vm315_vm14 = vcmp.eq.s32.totalorder %v1519_v41, %v1504_v8  ;;  %vm331_vm10 = vcmp.eq.s32.totalorder %v1521_v43, %v1495_v5  ;;  %vm332_vm11 = vcmp.eq.s32.totalorder %v1521_v43, %v1498_v6 }
  0xea   : >> { %v364_v52 = vpop.permute.xlu1 %363  ;;  %vm293_vm3 = vcmp.eq.s32.totalorder %v288_v44, %v1495_v5  ;;  %vm294_vm2 = vcmp.eq.s32.totalorder %v288_v44, %v1498_v6  ;;  %v297_v57 = vsel %vm289_vm8, 1, %v1294_v45  ;;  %v298_v58 = vsel %vm290_vm9, 1, %v1294_v45  ;;  %v345_v19 = vpop.permute.xlu0 %344 }
  0xeb   : >> { %vm371_vm12 = vcmp.eq.s32.totalorder %v364_v52, %v1501_v7  ;;  %vm372_vm13 = vcmp.eq.s32.totalorder %v364_v52, %v1504_v8  ;;  %v299_v60 = vsel %vm291_vm4, 1, %v1294_v45  ;;  %v300_v61 = vsel %vm292_vm5, 1, %v1294_v45 }
  0xec   : >> { %v341_v62 = vsel %vm333_vm6, 2, %v303_v55  ;;  %v342_v63 = vsel %vm334_vm7, 2, %v304_v56  ;;  %v301_v0 = vsel %vm293_vm3, 1, %v1294_v45  ;;  %v302_v10 = vsel %vm294_vm2, 1, %v1294_v45 }
  0xed   : >> { %v1601_v11 = vsel %vm371_vm12, 3, %v341_v62  ;;  %v1603_v12 = vsel %vm372_vm13, 3, %v342_v63  ;;  %vm365_vm8 = vcmp.eq.s32.totalorder %v364_v52, %v1479_v1  ;;  %vm366_vm9 = vcmp.eq.s32.totalorder %v364_v52, %v1486_v2 }
  0xee   : >> { %vm367_vm4 = vcmp.eq.s32.totalorder %v364_v52, %v1489_v3  ;;  %vm368_vm5 = vcmp.eq.s32.totalorder %v364_v52, %v1492_v4  ;;  %v335_v13 = vsel %vm327_vm0, 2, %v297_v57  ;;  %v336_v14 = vsel %vm328_vm1, 2, %v298_v58 }
  0xef   : >> { %v1593_v59 = vpop.permute.xlu1 %382  ;;  %vm369_vm2 = vcmp.eq.s32.totalorder %v364_v52, %v1495_v5  ;;  %vm370_vm3 = vcmp.eq.s32.totalorder %v364_v52, %v1498_v6  ;;  %vm2294_vm6 = vcmp.eq.s32.totalorder %v1521_v43, %v1489_v3  ;;  %vm2295_vm7 = vcmp.eq.s32.totalorder %v1521_v43, %v1492_v4  ;;  %v402_v42 = vpop.permute.xlu0 %401 }
  0xf0   : >> { %v337_v15 = vsel %vm2294_vm6, 2, %v299_v60  ;;  %v338_v16 = vsel %vm2295_vm7, 2, %v300_v61  ;;  %v339_v17 = vsel %vm331_vm10, 2, %v301_v0  ;;  %v340_v18 = vsel %vm332_vm11, 2, %v302_v10 }
  0xf1   : >> { %v373_v20 = vsel %vm365_vm8, 3, %v335_v13  ;;  %v374_v21 = vsel %vm366_vm9, 3, %v336_v14  ;;  %v375_v22 = vsel %vm367_vm4, 3, %v337_v15  ;;  %v376_v23 = vsel %vm368_vm5, 3, %v338_v16 }
  0xf2   : >> { %v377_v25 = vsel %vm369_vm2, 3, %v339_v17  ;;  %v378_v26 = vsel %vm370_vm3, 3, %v340_v18  ;;  %vm2296_vm0 = vcmp.eq.s32.totalorder %v1519_v41, %v1479_v1  ;;  %vm2297_vm1 = vcmp.eq.s32.totalorder %v1519_v41, %v1486_v2 }
  0xf3   : >> { %v316_v27 = vsel %vm2296_vm0, 2, %v1531_v46  ;;  %v317_v28 = vsel %vm2297_vm1, 2, %v1533_v47  ;;  %vm2298_vm10 = vcmp.eq.s32.totalorder %v1519_v41, %v1489_v3  ;;  %vm2299_vm11 = vcmp.eq.s32.totalorder %v1519_v41, %v1492_v4 }
  0xf4   : >> { %v1629_v24 = vpop.permute.xlu1 %420  ;;  %v318_v29 = vsel %vm2298_vm10, 2, %v1535_v48  ;;  %v319_v30 = vsel %vm2299_vm11, 2, %v1537_v49  ;;  %vm346_vm12 = vcmp.eq.s32.totalorder %v345_v19, %v1479_v1  ;;  %vm347_vm13 = vcmp.eq.s32.totalorder %v345_v19, %v1486_v2  ;;  %v459_v60 = vpop.permute.xlu0 %458 }
  0xf5   : >> { %vm2300_vm8 = vcmp.eq.s32.totalorder %v1519_v41, %v1495_v5  ;;  %vm2301_vm9 = vcmp.eq.s32.totalorder %v1519_v41, %v1498_v6  ;;  %vm348_vm4 = vcmp.eq.s32.totalorder %v345_v19, %v1489_v3  ;;  %vm349_vm5 = vcmp.eq.s32.totalorder %v345_v19, %v1492_v4 }
  0xf6   : >> { %v320_v31 = vsel %vm2300_vm8, 2, %v1539_v50  ;;  %v321_v32 = vsel %vm2301_vm9, 2, %v1541_v51  ;;  %v322_v33 = vsel %vm314_vm15, 2, %v1543_v53  ;;  %v323_v34 = vsel %vm315_vm14, 2, %v1545_v54 }
  0xf7   : >> { %vm350_vm2 = vcmp.eq.s32.totalorder %v345_v19, %v1495_v5  ;;  %vm351_vm3 = vcmp.eq.s32.totalorder %v345_v19, %v1498_v6  ;;  %vm352_vm6 = vcmp.eq.s32.totalorder %v345_v19, %v1501_v7  ;;  %vm353_vm7 = vcmp.eq.s32.totalorder %v345_v19, %v1504_v8 }
  0xf8   : >> { %v354_v35 = vsel %vm346_vm12, 3, %v316_v27  ;;  %v355_v36 = vsel %vm347_vm13, 3, %v317_v28  ;;  %v356_v37 = vsel %vm348_vm4, 3, %v318_v29  ;;  %v357_v38 = vsel %vm349_vm5, 3, %v319_v30  ;;  %v1675_v39 = vpop.permute.xlu1 %439 }
  0xf9   : >> { %vm384_vm15 = vcmp.eq.s32.totalorder %v1593_v59, %v1479_v1  ;;  %vm385_vm0 = vcmp.eq.s32.totalorder %v1593_v59, %v1486_v2  ;;  %v358_v40 = vsel %vm350_vm2, 3, %v320_v31  ;;  %v359_v41 = vsel %vm351_vm3, 3, %v321_v32  ;;  %v516_v32 = vpop.permute.xlu0 %515 }
  0xfa   : >> { %vm386_vm14 = vcmp.eq.s32.totalorder %v1593_v59, %v1489_v3  ;;  %vm387_vm1 = vcmp.eq.s32.totalorder %v1593_v59, %v1492_v4  ;;  %v360_v43 = vsel %vm352_vm6, 3, %v322_v33  ;;  %v361_v44 = vsel %vm353_vm7, 3, %v323_v34 }
  0xfb   : >> { %vm388_vm10 = vcmp.eq.s32.totalorder %v1593_v59, %v1495_v5  ;;  %vm389_vm11 = vcmp.eq.s32.totalorder %v1593_v59, %v1498_v6  ;;  %vm390_vm12 = vcmp.eq.s32.totalorder %v1593_v59, %v1501_v7  ;;  %vm391_vm13 = vcmp.eq.s32.totalorder %v1593_v59, %v1504_v8 }
  0xfc   : >> { %v392_v45 = vsel %vm384_vm15, 4, %v354_v35  ;;  %v393_v46 = vsel %vm385_vm0, 4, %v355_v36  ;;  %v394_v47 = vsel %vm386_vm14, 4, %v356_v37  ;;  %v395_v48 = vsel %vm387_vm1, 4, %v357_v38 }
  0xfd   : >> { %vm403_vm8 = vcmp.eq.s32.totalorder %v402_v42, %v1479_v1  ;;  %vm404_vm9 = vcmp.eq.s32.totalorder %v402_v42, %v1486_v2  ;;  %v396_v49 = vsel %vm388_vm10, 4, %v358_v40  ;;  %v397_v50 = vsel %vm389_vm11, 4, %v359_v41  ;;  %v1695_v53 = vpop.permute.xlu1 %477 }
  0xfe   : >> { %vm405_vm4 = vcmp.eq.s32.totalorder %v402_v42, %v1489_v3  ;;  %vm406_vm5 = vcmp.eq.s32.totalorder %v402_v42, %v1492_v4  ;;  %v398_v51 = vsel %vm390_vm12, 4, %v360_v43  ;;  %v399_v52 = vsel %vm391_vm13, 4, %v361_v44 }
  0xff   : >> { %vm407_vm2 = vcmp.eq.s32.totalorder %v402_v42, %v1495_v5  ;;  %vm408_vm3 = vcmp.eq.s32.totalorder %v402_v42, %v1498_v6  ;;  %vm409_vm6 = vcmp.eq.s32.totalorder %v402_v42, %v1501_v7  ;;  %vm410_vm7 = vcmp.eq.s32.totalorder %v402_v42, %v1504_v8 }
 0x100   : >> { %v411_v54 = vsel %vm403_vm8, 4, %v373_v20  ;;  %v412_v55 = vsel %vm404_vm9, 4, %v374_v21  ;;  %v413_v56 = vsel %vm405_vm4, 4, %v375_v22  ;;  %v414_v57 = vsel %vm406_vm5, 4, %v376_v23 }
 0x101   : >> { %vm422_vm15 = vcmp.eq.s32.totalorder %v1629_v24, %v1479_v1  ;;  %vm423_vm0 = vcmp.eq.s32.totalorder %v1629_v24, %v1486_v2  ;;  %v415_v58 = vsel %vm407_vm2, 4, %v377_v25  ;;  %v416_v59 = vsel %vm408_vm3, 4, %v378_v26 }
 0x102   : >> { %vm424_vm14 = vcmp.eq.s32.totalorder %v1629_v24, %v1489_v3  ;;  %vm425_vm1 = vcmp.eq.s32.totalorder %v1629_v24, %v1492_v4  ;;  %v417_v61 = vsel %vm409_vm6, 4, %v1601_v11  ;;  %v418_v62 = vsel %vm410_vm7, 4, %v1603_v12  ;;  %v1719_v11 = vpop.permute.xlu1 %496 }
 0x103   : >> { %vm426_vm10 = vcmp.eq.s32.totalorder %v1629_v24, %v1495_v5  ;;  %vm427_vm11 = vcmp.eq.s32.totalorder %v1629_v24, %v1498_v6  ;;  %vm428_vm12 = vcmp.eq.s32.totalorder %v1629_v24, %v1501_v7  ;;  %vm429_vm13 = vcmp.eq.s32.totalorder %v1629_v24, %v1504_v8 }
 0x104   : >> { %v430_v63 = vsel %vm422_vm15, 5, %v392_v45  ;;  %v431_v0 = vsel %vm423_vm0, 5, %v393_v46  ;;  %v432_v10 = vsel %vm424_vm14, 5, %v394_v47  ;;  %v433_v13 = vsel %vm425_vm1, 5, %v395_v48 }
 0x105   : >> { %vm460_vm8 = vcmp.eq.s32.totalorder %v459_v60, %v1479_v1  ;;  %vm461_vm9 = vcmp.eq.s32.totalorder %v459_v60, %v1486_v2  ;;  %v434_v12 = vsel %vm426_vm10, 5, %v396_v49  ;;  %v435_v14 = vsel %vm427_vm11, 5, %v397_v50 }
 0x106   : >> { %vm462_vm4 = vcmp.eq.s32.totalorder %v459_v60, %v1489_v3  ;;  %vm463_vm5 = vcmp.eq.s32.totalorder %v459_v60, %v1492_v4  ;;  %v436_v15 = vsel %vm428_vm12, 5, %v398_v51  ;;  %v437_v16 = vsel %vm429_vm13, 5, %v399_v52 }
 0x107   : >> { %vm464_vm2 = vcmp.eq.s32.totalorder %v459_v60, %v1495_v5  ;;  %vm465_vm3 = vcmp.eq.s32.totalorder %v459_v60, %v1498_v6  ;;  %vm466_vm6 = vcmp.eq.s32.totalorder %v459_v60, %v1501_v7  ;;  %vm467_vm7 = vcmp.eq.s32.totalorder %v459_v60, %v1504_v8  ;;  %v1755_v25 = vpop.permute.xlu1 %534 }
 0x108   : >> { %v1727_v17 = vsel %vm460_vm8, 6, %v430_v63  ;;  %v1729_v18 = vsel %vm461_vm9, 6, %v431_v0  ;;  %v1731_v19 = vsel %vm462_vm4, 6, %v432_v10  ;;  %v1733_v20 = vsel %vm463_vm5, 6, %v433_v13 }
 0x109   : >> { %vm441_vm15 = vcmp.eq.s32.totalorder %v1675_v39, %v1479_v1  ;;  %vm442_vm0 = vcmp.eq.s32.totalorder %v1675_v39, %v1486_v2  ;;  %v1739_v21 = vsel %vm464_vm2, 6, %v434_v12  ;;  %v1741_v22 = vsel %vm465_vm3, 6, %v435_v14 }
 0x10a   : >> { %vm443_vm14 = vcmp.eq.s32.totalorder %v1675_v39, %v1489_v3  ;;  %vm444_vm1 = vcmp.eq.s32.totalorder %v1675_v39, %v1492_v4  ;;  %v1747_v23 = vsel %vm466_vm6, 6, %v436_v15  ;;  %v1749_v24 = vsel %vm467_vm7, 6, %v437_v16 }
 0x10b   : >> { %vm445_vm10 = vcmp.eq.s32.totalorder %v1675_v39, %v1495_v5  ;;  %vm446_vm11 = vcmp.eq.s32.totalorder %v1675_v39, %v1498_v6  ;;  %vm447_vm12 = vcmp.eq.s32.totalorder %v1675_v39, %v1501_v7  ;;  %vm448_vm13 = vcmp.eq.s32.totalorder %v1675_v39, %v1504_v8  ;;  %v1779_v39 = vpop.permute.xlu1 %553 }
 0x10c   : >> { %v449_v26 = vsel %vm441_vm15, 5, %v411_v54  ;;  %v450_v27 = vsel %vm442_vm0, 5, %v412_v55  ;;  %v451_v28 = vsel %vm443_vm14, 5, %v413_v56  ;;  %v452_v29 = vsel %vm444_vm1, 5, %v414_v57 }
 0x10d   : >> { %vm479_vm8 = vcmp.eq.s32.totalorder %v1695_v53, %v1479_v1  ;;  %vm480_vm9 = vcmp.eq.s32.totalorder %v1695_v53, %v1486_v2  ;;  %v453_v30 = vsel %vm445_vm10, 5, %v415_v58  ;;  %v454_v31 = vsel %vm446_vm11, 5, %v416_v59  ;;  %v573_v59 = vpop.permute.xlu0 %572 }
 0x10e   : >> { %vm481_vm4 = vcmp.eq.s32.totalorder %v1695_v53, %v1489_v3  ;;  %vm482_vm5 = vcmp.eq.s32.totalorder %v1695_v53, %v1492_v4  ;;  %v455_v33 = vsel %vm447_vm12, 5, %v417_v61  ;;  %v456_v34 = vsel %vm448_vm13, 5, %v418_v62 }
 0x10f   : >> { %vm483_vm2 = vcmp.eq.s32.totalorder %v1695_v53, %v1495_v5  ;;  %vm484_vm3 = vcmp.eq.s32.totalorder %v1695_v53, %v1498_v6  ;;  %vm485_vm6 = vcmp.eq.s32.totalorder %v1695_v53, %v1501_v7  ;;  %vm486_vm7 = vcmp.eq.s32.totalorder %v1695_v53, %v1504_v8 }
 0x110   : >> { %v487_v35 = vsel %vm479_vm8, 6, %v449_v26  ;;  %v488_v36 = vsel %vm480_vm9, 6, %v450_v27  ;;  %v489_v37 = vsel %vm481_vm4, 6, %v451_v28  ;;  %v490_v38 = vsel %vm482_vm5, 6, %v452_v29  ;;  %v1815_v52 = vpop.permute.xlu1 %591 }
 0x111   : >> { %vm517_vm15 = vcmp.eq.s32.totalorder %v516_v32, %v1479_v1  ;;  %vm518_vm0 = vcmp.eq.s32.totalorder %v516_v32, %v1486_v2  ;;  %v491_v40 = vsel %vm483_vm2, 6, %v453_v30  ;;  %v492_v41 = vsel %vm484_vm3, 6, %v454_v31  ;;  %v630_v31 = vpop.permute.xlu0 %629 }
 0x112   : >> { %vm519_vm14 = vcmp.eq.s32.totalorder %v516_v32, %v1489_v3  ;;  %vm520_vm1 = vcmp.eq.s32.totalorder %v516_v32, %v1492_v4  ;;  %v493_v42 = vsel %vm485_vm6, 6, %v455_v33  ;;  %v494_v43 = vsel %vm486_vm7, 6, %v456_v34 }
 0x113   : >> { %vm521_vm10 = vcmp.eq.s32.totalorder %v516_v32, %v1495_v5  ;;  %vm522_vm11 = vcmp.eq.s32.totalorder %v516_v32, %v1498_v6  ;;  %vm523_vm12 = vcmp.eq.s32.totalorder %v516_v32, %v1501_v7  ;;  %vm524_vm13 = vcmp.eq.s32.totalorder %v516_v32, %v1504_v8 }
 0x114   : >> { %v1787_v44 = vsel %vm517_vm15, 7, %v487_v35  ;;  %v1789_v45 = vsel %vm518_vm0, 7, %v488_v36  ;;  %v1791_v46 = vsel %vm519_vm14, 7, %v489_v37  ;;  %v1793_v47 = vsel %vm520_vm1, 7, %v490_v38 }
 0x115   : >> { %vm498_vm8 = vcmp.eq.s32.totalorder %v1719_v11, %v1479_v1  ;;  %vm499_vm9 = vcmp.eq.s32.totalorder %v1719_v11, %v1486_v2  ;;  %v1799_v48 = vsel %vm521_vm10, 7, %v491_v40  ;;  %v1801_v49 = vsel %vm522_vm11, 7, %v492_v41  ;;  %v1847_v13 = vpop.permute.xlu1 %610 }
 0x116   : >> { %vm500_vm4 = vcmp.eq.s32.totalorder %v1719_v11, %v1489_v3  ;;  %vm501_vm5 = vcmp.eq.s32.totalorder %v1719_v11, %v1492_v4  ;;  %v1807_v50 = vsel %vm523_vm12, 7, %v493_v42  ;;  %v1809_v51 = vsel %vm524_vm13, 7, %v494_v43 }
 0x117   : >> { %vm502_vm2 = vcmp.eq.s32.totalorder %v1719_v11, %v1495_v5  ;;  %vm503_vm3 = vcmp.eq.s32.totalorder %v1719_v11, %v1498_v6  ;;  %vm504_vm6 = vcmp.eq.s32.totalorder %v1719_v11, %v1501_v7  ;;  %vm505_vm7 = vcmp.eq.s32.totalorder %v1719_v11, %v1504_v8 }
 0x118   : >> { %v506_v53 = vsel %vm498_vm8, 7, %v1727_v17  ;;  %v507_v54 = vsel %vm499_vm9, 7, %v1729_v18  ;;  %v508_v55 = vsel %vm500_vm4, 7, %v1731_v19  ;;  %v509_v56 = vsel %vm501_vm5, 7, %v1733_v20 }
 0x119   : >> { %vm536_vm15 = vcmp.eq.s32.totalorder %v1755_v25, %v1479_v1  ;;  %vm537_vm0 = vcmp.eq.s32.totalorder %v1755_v25, %v1486_v2  ;;  %v510_v57 = vsel %vm502_vm2, 7, %v1739_v21  ;;  %v511_v58 = vsel %vm503_vm3, 7, %v1741_v22 }
 0x11a   : >> { %vm538_vm14 = vcmp.eq.s32.totalorder %v1755_v25, %v1489_v3  ;;  %vm539_vm1 = vcmp.eq.s32.totalorder %v1755_v25, %v1492_v4  ;;  %v512_v60 = vsel %vm504_vm6, 7, %v1747_v23  ;;  %v513_v61 = vsel %vm505_vm7, 7, %v1749_v24  ;;  %v1883_v24 = vpop.permute.xlu1 %648 }
 0x11b   : >> { %vm540_vm10 = vcmp.eq.s32.totalorder %v1755_v25, %v1495_v5  ;;  %vm541_vm11 = vcmp.eq.s32.totalorder %v1755_v25, %v1498_v6  ;;  %vm542_vm12 = vcmp.eq.s32.totalorder %v1755_v25, %v1501_v7  ;;  %vm543_vm13 = vcmp.eq.s32.totalorder %v1755_v25, %v1504_v8 }
 0x11c   : >> { %v544_v62 = vsel %vm536_vm15, 8, %v506_v53  ;;  %v545_v63 = vsel %vm537_vm0, 8, %v507_v54  ;;  %v546_v0 = vsel %vm538_vm14, 8, %v508_v55  ;;  %v547_v10 = vsel %vm539_vm1, 8, %v509_v56 }
 0x11d   : >> { %vm574_vm8 = vcmp.eq.s32.totalorder %v573_v59, %v1479_v1  ;;  %vm575_vm9 = vcmp.eq.s32.totalorder %v573_v59, %v1486_v2  ;;  %v548_v11 = vsel %vm540_vm10, 8, %v510_v57  ;;  %v549_v12 = vsel %vm541_vm11, 8, %v511_v58  ;;  %v687_v58 = vpop.permute.xlu0 %686 }
 0x11e   : >> { %vm576_vm4 = vcmp.eq.s32.totalorder %v573_v59, %v1489_v3  ;;  %vm577_vm5 = vcmp.eq.s32.totalorder %v573_v59, %v1492_v4  ;;  %v550_v14 = vsel %vm542_vm12, 8, %v512_v60  ;;  %v551_v15 = vsel %vm543_vm13, 8, %v513_v61  ;;  %v1915_v38 = vpop.permute.xlu1 %667 }
 0x11f   : >> { %vm578_vm2 = vcmp.eq.s32.totalorder %v573_v59, %v1495_v5  ;;  %vm579_vm3 = vcmp.eq.s32.totalorder %v573_v59, %v1498_v6  ;;  %vm580_vm6 = vcmp.eq.s32.totalorder %v573_v59, %v1501_v7  ;;  %vm581_vm7 = vcmp.eq.s32.totalorder %v573_v59, %v1504_v8 }
 0x120   : >> { %v1855_v16 = vsel %vm574_vm8, 9, %v544_v62  ;;  %v1857_v17 = vsel %vm575_vm9, 9, %v545_v63  ;;  %v1859_v18 = vsel %vm576_vm4, 9, %v546_v0  ;;  %v1861_v19 = vsel %vm577_vm5, 9, %v547_v10 }
 0x121   : >> { %vm555_vm15 = vcmp.eq.s32.totalorder %v1779_v39, %v1479_v1  ;;  %vm556_vm0 = vcmp.eq.s32.totalorder %v1779_v39, %v1486_v2  ;;  %v1867_v20 = vsel %vm578_vm2, 9, %v548_v11  ;;  %v1869_v21 = vsel %vm579_vm3, 9, %v549_v12 }
 0x122   : >> { %vm557_vm14 = vcmp.eq.s32.totalorder %v1779_v39, %v1489_v3  ;;  %vm558_vm1 = vcmp.eq.s32.totalorder %v1779_v39, %v1492_v4  ;;  %v1875_v22 = vsel %vm580_vm6, 9, %v550_v14  ;;  %v1877_v23 = vsel %vm581_vm7, 9, %v551_v15 }
 0x123   : >> { %vm559_vm10 = vcmp.eq.s32.totalorder %v1779_v39, %v1495_v5  ;;  %vm560_vm11 = vcmp.eq.s32.totalorder %v1779_v39, %v1498_v6  ;;  %vm561_vm12 = vcmp.eq.s32.totalorder %v1779_v39, %v1501_v7  ;;  %vm562_vm13 = vcmp.eq.s32.totalorder %v1779_v39, %v1504_v8 }
 0x124   : >> { %v563_v25 = vsel %vm555_vm15, 8, %v1787_v44  ;;  %v564_v26 = vsel %vm556_vm0, 8, %v1789_v45  ;;  %v565_v27 = vsel %vm557_vm14, 8, %v1791_v46  ;;  %v566_v28 = vsel %vm558_vm1, 8, %v1793_v47 }
 0x125   : >> { %vm593_vm8 = vcmp.eq.s32.totalorder %v1815_v52, %v1479_v1  ;;  %vm594_vm9 = vcmp.eq.s32.totalorder %v1815_v52, %v1486_v2  ;;  %v567_v29 = vsel %vm559_vm10, 8, %v1799_v48  ;;  %v568_v30 = vsel %vm560_vm11, 8, %v1801_v49  ;;  %v1951_v49 = vpop.permute.xlu1 %705 }
 0x126   : >> { %vm595_vm4 = vcmp.eq.s32.totalorder %v1815_v52, %v1489_v3  ;;  %vm596_vm5 = vcmp.eq.s32.totalorder %v1815_v52, %v1492_v4  ;;  %v569_v32 = vsel %vm561_vm12, 8, %v1807_v50  ;;  %v570_v33 = vsel %vm562_vm13, 8, %v1809_v51 }
 0x127   : >> { %vm597_vm2 = vcmp.eq.s32.totalorder %v1815_v52, %v1495_v5  ;;  %vm598_vm3 = vcmp.eq.s32.totalorder %v1815_v52, %v1498_v6  ;;  %vm599_vm6 = vcmp.eq.s32.totalorder %v1815_v52, %v1501_v7  ;;  %vm600_vm7 = vcmp.eq.s32.totalorder %v1815_v52, %v1504_v8 }
 0x128   : >> { %v601_v34 = vsel %vm593_vm8, 9, %v563_v25  ;;  %v602_v35 = vsel %vm594_vm9, 9, %v564_v26  ;;  %v603_v36 = vsel %vm595_vm4, 9, %v565_v27  ;;  %v604_v37 = vsel %vm596_vm5, 9, %v566_v28 }
 0x129   : >> { %vm631_vm15 = vcmp.eq.s32.totalorder %v630_v31, %v1479_v1  ;;  %vm632_vm0 = vcmp.eq.s32.totalorder %v630_v31, %v1486_v2  ;;  %v605_v39 = vsel %vm597_vm2, 9, %v567_v29  ;;  %v606_v40 = vsel %vm598_vm3, 9, %v568_v30  ;;  %v725_v61 = vpop.permute.xlu1 %724 }
 0x12a   : >> { %vm633_vm14 = vcmp.eq.s32.totalorder %v630_v31, %v1489_v3  ;;  %vm634_vm1 = vcmp.eq.s32.totalorder %v630_v31, %v1492_v4  ;;  %v607_v41 = vsel %vm599_vm6, 9, %v569_v32  ;;  %v608_v42 = vsel %vm600_vm7, 9, %v570_v33 }
 0x12b   : >> { %vm635_vm10 = vcmp.eq.s32.totalorder %v630_v31, %v1495_v5  ;;  %vm636_vm11 = vcmp.eq.s32.totalorder %v630_v31, %v1498_v6  ;;  %vm637_vm12 = vcmp.eq.s32.totalorder %v630_v31, %v1501_v7  ;;  %vm638_vm13 = vcmp.eq.s32.totalorder %v630_v31, %v1504_v8 }
 0x12c   : >> { %v1923_v43 = vsel %vm631_vm15, 10, %v601_v34  ;;  %v1925_v44 = vsel %vm632_vm0, 10, %v602_v35  ;;  %v1927_v45 = vsel %vm633_vm14, 10, %v603_v36  ;;  %v1929_v46 = vsel %vm634_vm1, 10, %v604_v37 }
 0x12d   : >> { %vm612_vm8 = vcmp.eq.s32.totalorder %v1847_v13, %v1479_v1  ;;  %vm613_vm9 = vcmp.eq.s32.totalorder %v1847_v13, %v1486_v2  ;;  %vm614_vm4 = vcmp.eq.s32.totalorder %v1847_v13, %v1489_v3  ;;  %vm615_vm5 = vcmp.eq.s32.totalorder %v1847_v13, %v1492_v4 }
 0x12e   : >> { %vm616_vm2 = vcmp.eq.s32.totalorder %v1847_v13, %v1495_v5  ;;  %vm617_vm3 = vcmp.eq.s32.totalorder %v1847_v13, %v1498_v6  ;;  %v1943_v47 = vsel %vm635_vm10, 10, %v605_v39  ;;  %v1945_v48 = vsel %vm636_vm11, 10, %v606_v40 }
 0x12f   : >> { %vm618_vm6 = vcmp.eq.s32.totalorder %v1847_v13, %v1501_v7  ;;  %vm619_vm7 = vcmp.eq.s32.totalorder %v1847_v13, %v1504_v8  ;;  %v1955_v50 = vsel %vm637_vm12, 10, %v607_v41  ;;  %v1959_v51 = vsel %vm638_vm13, 10, %v608_v42 }
 0x130   : >> { %v620_v52 = vsel %vm612_vm8, 10, %v1855_v16  ;;  %v621_v53 = vsel %vm613_vm9, 10, %v1857_v17  ;;  %v622_v54 = vsel %vm614_vm4, 10, %v1859_v18  ;;  %v623_v55 = vsel %vm615_vm5, 10, %v1861_v19 }
 0x131   : >> { %v624_v56 = vsel %vm616_vm2, 10, %v1867_v20  ;;  %v625_v57 = vsel %vm617_vm3, 10, %v1869_v21  ;;  %v626_v59 = vsel %vm618_vm6, 10, %v1875_v22  ;;  %v627_v60 = vsel %vm619_vm7, 10, %v1877_v23  ;;  %v2021_v21 = vpop.permute.xlu0 %743  ;;  %v763_v22 = vpop.permute.xlu1 %762 }
 0x132   : >> { %vm650_vm15 = vcmp.eq.s32.totalorder %v1883_v24, %v1479_v1  ;;  %vm651_vm0 = vcmp.eq.s32.totalorder %v1883_v24, %v1486_v2  ;;  %vm652_vm14 = vcmp.eq.s32.totalorder %v1883_v24, %v1489_v3  ;;  %vm653_vm1 = vcmp.eq.s32.totalorder %v1883_v24, %v1492_v4 }
 0x133   : >> { %vm654_vm10 = vcmp.eq.s32.totalorder %v1883_v24, %v1495_v5  ;;  %vm655_vm11 = vcmp.eq.s32.totalorder %v1883_v24, %v1498_v6  ;;  %vm656_vm12 = vcmp.eq.s32.totalorder %v1883_v24, %v1501_v7  ;;  %vm657_vm13 = vcmp.eq.s32.totalorder %v1883_v24, %v1504_v8 }
 0x134   : >> { %vm688_vm8 = vcmp.eq.s32.totalorder %v687_v58, %v1479_v1  ;;  %vm689_vm9 = vcmp.eq.s32.totalorder %v687_v58, %v1486_v2  ;;  %vm690_vm4 = vcmp.eq.s32.totalorder %v687_v58, %v1489_v3  ;;  %vm691_vm5 = vcmp.eq.s32.totalorder %v687_v58, %v1492_v4 }
 0x135   : >> { %vm692_vm2 = vcmp.eq.s32.totalorder %v687_v58, %v1495_v5  ;;  %vm693_vm3 = vcmp.eq.s32.totalorder %v687_v58, %v1498_v6  ;;  %v658_v62 = vsel %vm650_vm15, 11, %v620_v52  ;;  %v659_v63 = vsel %vm651_vm0, 11, %v621_v53  ;;  %v2069_v33 = vpop.permute.xlu0 %800  ;;  %v2097_v42 = vpop.permute.xlu1 %781 }
 0x136   : >> { %v660_v0 = vsel %vm652_vm14, 11, %v622_v54  ;;  %v661_v10 = vsel %vm653_vm1, 11, %v623_v55  ;;  %vm694_vm6 = vcmp.eq.s32.totalorder %v687_v58, %v1501_v7  ;;  %vm695_vm7 = vcmp.eq.s32.totalorder %v687_v58, %v1504_v8 }
 0x137   : >> { %v662_v13 = vsel %vm654_vm10, 11, %v624_v56  ;;  %v663_v11 = vsel %vm655_vm11, 11, %v625_v57  ;;  %v664_v12 = vsel %vm656_vm12, 11, %v626_v59  ;;  %v665_v14 = vsel %vm657_vm13, 11, %v627_v60 }
 0x138   : >> { %v696_v15 = vsel %vm688_vm8, 12, %v658_v62  ;;  %v697_v16 = vsel %vm689_vm9, 12, %v659_v63  ;;  %v698_v17 = vsel %vm690_vm4, 12, %v660_v0  ;;  %v699_v18 = vsel %vm691_vm5, 12, %v661_v10 }
 0x139   : >> { %v700_v19 = vsel %vm692_vm2, 12, %v662_v13  ;;  %v701_v20 = vsel %vm693_vm3, 12, %v663_v11  ;;  %vm726_vm15 = vcmp.eq.s32.totalorder %v725_v61, %v1479_v1  ;;  %vm727_vm0 = vcmp.eq.s32.totalorder %v725_v61, %v1486_v2 }
 0x13a   : >> { %vm728_vm14 = vcmp.eq.s32.totalorder %v725_v61, %v1489_v3  ;;  %vm729_vm1 = vcmp.eq.s32.totalorder %v725_v61, %v1492_v4  ;;  %v702_v23 = vsel %vm694_vm6, 12, %v664_v12  ;;  %v703_v24 = vsel %vm695_vm7, 12, %v665_v14  ;;  %v820_v12 = vpop.permute.xlu1 %819 }
 0x13b   : >> { %vm730_vm10 = vcmp.eq.s32.totalorder %v725_v61, %v1495_v5  ;;  %vm731_vm11 = vcmp.eq.s32.totalorder %v725_v61, %v1498_v6  ;;  %vm732_vm12 = vcmp.eq.s32.totalorder %v725_v61, %v1501_v7  ;;  %vm733_vm13 = vcmp.eq.s32.totalorder %v725_v61, %v1504_v8 }
 0x13c   : >> { %v734_v25 = vsel %vm726_vm15, 13, %v696_v15  ;;  %v735_v26 = vsel %vm727_vm0, 13, %v697_v16  ;;  %vm669_vm8 = vcmp.eq.s32.totalorder %v1915_v38, %v1479_v1  ;;  %vm670_vm9 = vcmp.eq.s32.totalorder %v1915_v38, %v1486_v2 }
 0x13d   : >> { %vm671_vm4 = vcmp.eq.s32.totalorder %v1915_v38, %v1489_v3  ;;  %vm672_vm5 = vcmp.eq.s32.totalorder %v1915_v38, %v1492_v4  ;;  %v736_v27 = vsel %vm728_vm14, 13, %v698_v17  ;;  %v737_v28 = vsel %vm729_vm1, 13, %v699_v18 }
 0x13e   : >> { %v738_v29 = vsel %vm730_vm10, 13, %v700_v19  ;;  %v739_v30 = vsel %vm731_vm11, 13, %v701_v20  ;;  %vm764_vm15 = vcmp.eq.s32.totalorder %v763_v22, %v1479_v1  ;;  %vm765_vm0 = vcmp.eq.s32.totalorder %v763_v22, %v1486_v2 }
 0x13f   : >> { %vm766_vm14 = vcmp.eq.s32.totalorder %v763_v22, %v1489_v3  ;;  %vm767_vm1 = vcmp.eq.s32.totalorder %v763_v22, %v1492_v4  ;;  %vm710_vm7 = vcmp.eq.s32.totalorder %v1951_v49, %v1492_v4  ;;  %v740_v31 = vsel %vm732_vm12, 13, %v702_v23 }
 0x140   : >> { %v741_v32 = vsel %vm733_vm13, 13, %v703_v24  ;;  %vm769_vm3 = vcmp.eq.s32.totalorder %v763_v22, %v1498_v6  ;;  %vm770_vm2 = vcmp.eq.s32.totalorder %v763_v22, %v1501_v7  ;;  %vm768_vm6 = vcmp.eq.s32.totalorder %v763_v22, %v1495_v5 }
 0x141   : >> { %vm771_vm10 = vcmp.eq.s32.totalorder %v763_v22, %v1504_v8  ;;  %v772_v34 = vsel %vm764_vm15, 14, %v734_v25  ;;  %v773_v35 = vsel %vm765_vm0, 14, %v735_v26  ;;  %v774_v36 = vsel %vm766_vm14, 14, %v736_v27 }
 0x142   : >> { %v775_v37 = vsel %vm767_vm1, 14, %v737_v28  ;;  %v777_v39 = vsel %vm769_vm3, 14, %v739_v30  ;;  %v778_v40 = vsel %vm770_vm2, 14, %v740_v31  ;;  %vm802_vm12 = vcmp.eq.s32.totalorder %v2069_v33, %v1479_v1 }
 0x143   : >> { %vm803_vm13 = vcmp.eq.s32.totalorder %v2069_v33, %v1486_v2  ;;  %vm804_vm15 = vcmp.eq.s32.totalorder %v2069_v33, %v1489_v3  ;;  %vm805_vm0 = vcmp.eq.s32.totalorder %v2069_v33, %v1492_v4  ;;  %v779_v41 = vsel %vm771_vm10, 14, %v741_v32 }
 0x144   : >> { %vm807_vm14 = vcmp.eq.s32.totalorder %v2069_v33, %v1498_v6  ;;  %vm808_vm3 = vcmp.eq.s32.totalorder %v2069_v33, %v1501_v7  ;;  %vm809_vm2 = vcmp.eq.s32.totalorder %v2069_v33, %v1504_v8  ;;  %vm712_vm1 = vcmp.eq.s32.totalorder %v1951_v49, %v1498_v6 }
 0x145   : >> { %vm713_vm11 = vcmp.eq.s32.totalorder %v1951_v49, %v1501_v7  ;;  %v2107_v52 = vsel %vm768_vm6, 14, %v738_v29  ;;  %v2109_v53 = vsel %vm802_vm12, 15, %v772_v34  ;;  %v2111_v54 = vsel %vm803_vm13, 15, %v773_v35 }
 0x146   : >> { %v2113_v55 = vsel %vm804_vm15, 15, %v774_v36  ;;  %v2115_v56 = vsel %vm805_vm0, 15, %v775_v37  ;;  %v2117_v57 = vsel %vm807_vm14, 15, %v777_v39  ;;  %v2119_v58 = vsel %vm808_vm3, 15, %v778_v40 }
 0x147   : >> { %v2121_v59 = vsel %vm809_vm2, 15, %v779_v41  ;;  %vm783_vm10 = vcmp.eq.s32.totalorder %v2097_v42, %v1479_v1  ;;  %vm784_vm6 = vcmp.eq.s32.totalorder %v2097_v42, %v1486_v2  ;;  %vm785_vm12 = vcmp.eq.s32.totalorder %v2097_v42, %v1489_v3 }
 0x148   : >> { %vm786_vm13 = vcmp.eq.s32.totalorder %v2097_v42, %v1492_v4  ;;  %vm788_vm15 = vcmp.eq.s32.totalorder %v2097_v42, %v1498_v6  ;;  %v677_v60 = vsel %vm669_vm8, 11, %v1923_v43  ;;  %v678_v61 = vsel %vm670_vm9, 11, %v1925_v44 }
 0x149   : >> { %v679_v62 = vsel %vm671_vm4, 11, %v1927_v45  ;;  %v680_v63 = vsel %vm672_vm5, 11, %v1929_v46  ;;  %vm2302_vm0 = vcmp.eq.s32.totalorder %v1915_v38, %v1495_v5  ;;  %vm2303_vm8 = vcmp.eq.s32.totalorder %v1915_v38, %v1498_v6 }
 0x14a   : >> { %v681_v43 = vsel %vm2302_vm0, 11, %v1943_v47  ;;  %v682_v44 = vsel %vm2303_vm8, 11, %v1945_v48  ;;  %vm2304_vm9 = vcmp.eq.s32.totalorder %v1915_v38, %v1501_v7  ;;  %vm2305_vm4 = vcmp.eq.s32.totalorder %v1915_v38, %v1504_v8 }
 0x14b   : >> { %v683_v45 = vsel %vm2304_vm9, 11, %v1955_v50  ;;  %v684_v46 = vsel %vm2305_vm4, 11, %v1959_v51  ;;  %vm2306_vm5 = vcmp.eq.s32.totalorder %v1951_v49, %v1479_v1  ;;  %vm2307_vm14 = vcmp.eq.s32.totalorder %v1951_v49, %v1486_v2 }
 0x14c   : >> { %v715_v0 = vsel %vm2306_vm5, 12, %v677_v60  ;;  %v716_v47 = vsel %vm2307_vm14, 12, %v678_v61  ;;  %vm2308_vm3 = vcmp.eq.s32.totalorder %v1951_v49, %v1489_v3  ;;  %v718_v50 = vsel %vm710_vm7, 12, %v680_v63 }
 0x14d   : >> { %v717_v48 = vsel %vm2308_vm3, 12, %v679_v62  ;;  %vm2309_vm0 = vcmp.eq.s32.totalorder %v1951_v49, %v1495_v5  ;;  %v720_v51 = vsel %vm712_vm1, 12, %v682_v44  ;;  %v721_v10 = vsel %vm713_vm11, 12, %v683_v45 }
 0x14e   : >> { %v719_v38 = vsel %vm2309_vm0, 12, %v681_v43  ;;  %vm2310_vm8 = vcmp.eq.s32.totalorder %v1951_v49, %v1504_v8  ;;  %vm745_vm7 = vcmp.eq.s32.totalorder %v2021_v21, %v1479_v1  ;;  %vm746_vm9 = vcmp.eq.s32.totalorder %v2021_v21, %v1486_v2 }
 0x14f   : >> { %v722_v13 = vsel %vm2310_vm8, 12, %v684_v46  ;;  %vm747_vm4 = vcmp.eq.s32.totalorder %v2021_v21, %v1489_v3  ;;  %vm748_vm1 = vcmp.eq.s32.totalorder %v2021_v21, %v1492_v4  ;;  %vm749_vm5 = vcmp.eq.s32.totalorder %v2021_v21, %v1495_v5 }
 0x150   : >> { %vm750_vm11 = vcmp.eq.s32.totalorder %v2021_v21, %v1498_v6  ;;  %vm751_vm14 = vcmp.eq.s32.totalorder %v2021_v21, %v1501_v7  ;;  %vm752_vm3 = vcmp.eq.s32.totalorder %v2021_v21, %v1504_v8  ;;  %vm806_vm0 = vcmp.eq.s32.totalorder %v2069_v33, %v1495_v5 }
 0x151   : >> { %vm789_vm8 = vcmp.eq.s32.totalorder %v2097_v42, %v1501_v7  ;;  %vm790_vm2 = vcmp.eq.s32.totalorder %v2097_v42, %v1504_v8  ;;  %v753_v49 = vsel %vm745_vm7, 13, %v715_v0  ;;  %v754_v11 = vsel %vm746_vm9, 13, %v716_v47 }
 0x152   : >> { %v755_v14 = vsel %vm747_vm4, 13, %v717_v48  ;;  %v756_v15 = vsel %vm748_vm1, 13, %v718_v50  ;;  %v757_v16 = vsel %vm749_vm5, 13, %v719_v38  ;;  %v758_v17 = vsel %vm750_vm11, 13, %v720_v51 }
 0x153   : >> { %v759_v18 = vsel %vm751_vm14, 13, %v721_v10  ;;  %v760_v19 = vsel %vm752_vm3, 13, %v722_v13  ;;  %v791_v20 = vsel %vm783_vm10, 14, %v753_v49  ;;  %v792_v21 = vsel %vm784_vm6, 14, %v754_v11 }
 0x154   : >> { %v793_v22 = vsel %vm785_vm12, 14, %v755_v14  ;;  %v794_v23 = vsel %vm786_vm13, 14, %v756_v15  ;;  %v796_v24 = vsel %vm788_vm15, 14, %v758_v17  ;;  %v797_v25 = vsel %vm789_vm8, 14, %v759_v18 }
 0x155   : >> { %vm821_vm10 = vcmp.eq.s32.totalorder %v820_v12, %v1479_v1  ;;  %vm822_vm6 = vcmp.eq.s32.totalorder %v820_v12, %v1486_v2  ;;  %vm823_vm7 = vcmp.eq.s32.totalorder %v820_v12, %v1489_v3  ;;  %vm824_vm12 = vcmp.eq.s32.totalorder %v820_v12, %v1492_v4 }
 0x156   : >> { %v798_v26 = vsel %vm790_vm2, 14, %v760_v19  ;;  %vm826_vm13 = vcmp.eq.s32.totalorder %v820_v12, %v1498_v6  ;;  %vm827_vm15 = vcmp.eq.s32.totalorder %v820_v12, %v1501_v7  ;;  %vm828_vm9 = vcmp.eq.s32.totalorder %v820_v12, %v1504_v8 }
 0x157   : >> { %vm825_vm4 = vcmp.eq.s32.totalorder %v820_v12, %v1495_v5  ;;  %v829_v27 = vsel %vm821_vm10, 15, %v791_v20  ;;  %v830_v28 = vsel %vm822_vm6, 15, %v792_v21  ;;  %v831_v29 = vsel %vm823_vm7, 15, %v793_v22 }
 0x158   : >> { %v832_v30 = vsel %vm824_vm12, 15, %v794_v23  ;;  %v834_v31 = vsel %vm826_vm13, 15, %v796_v24  ;;  %v835_v32 = vsel %vm827_vm15, 15, %v797_v25  ;;  %v836_v34 = vsel %vm828_vm9, 15, %v798_v26 }
 0x159   : >> { %vm2311_vm1 = vcmp.eq.s32.totalorder %v2097_v42, %v1495_v5  ;;  %v837_v36 = vsub.s32 %v2109_v53, %v829_v27  ;;  %v838_v37 = vsub.s32 %v2111_v54, %v830_v28  ;;  %v839_v39 = vsub.s32 %v2113_v55, %v831_v29 }
 0x15a   : >> { %v795_v35 = vsel %vm2311_vm1, 14, %v757_v16  ;;  %v842_v41 = vsub.s32 %v2117_v57, %v834_v31  ;;  %v843_v60 = vsub.s32 %v2119_v58, %v835_v32  ;;  %v844_v61 = vsub.s32 %v2121_v59, %v836_v34 }
 0x15b   : >> { %v833_v40 = vsel %vm825_vm4, 15, %v795_v35  ;;  %v840_v62 = vsub.s32 %v2115_v56, %v832_v30  ;;  %v845_v63 = vcvt.s32.f32 %v837_v36  ;;  %v846_v43 = vcvt.s32.f32 %v838_v37 }
 0x15c   : >> { %v814_v42 = vsel %vm806_vm0, 15, %v2107_v52  ;;  %v847_v54 = vcvt.s32.f32 %v839_v39  ;;  %v850_v59 = vcvt.s32.f32 %v842_v41  ;;  %v851_v48 = vcvt.s32.f32 %v843_v60 }
 0x15d   : >> { %v841_v53 = vsub.s32 %v814_v42, %v833_v40  ;;  %v853_v44 = vmul.f32 %v845_v63, %v845_v63  ;;  %v848_v55 = vcvt.s32.f32 %v840_v62  ;;  %v854_v45 = vmul.f32 %v846_v43, %v846_v43 }
 0x15e   : >> { %v855_v58 = vmul.f32 %v847_v54, %v847_v54  ;;  %v852_v51 = vcvt.s32.f32 %v844_v61  ;;  %v858_v10 = vmul.f32 %v850_v59, %v850_v59  ;;  %v859_v52 = vmul.f32 %v851_v48, %v851_v48 }
 0x15f   : >> { %v861_v57 = vadd.f32 %v1269_v9, %v853_v44  ;;  %v849_v46 = vcvt.s32.f32 %v841_v53  ;;  %v856_v47 = vmul.f32 %v848_v55, %v848_v55  ;;  %vm879_vm2 = vcmask (%p241_p11), 0  }
 0x160   : >> { %v860_v49 = vmul.f32 %v852_v51, %v852_v51 }
 0x161   : >> { %v862_v0 = vadd.f32 %v861_v57, %v854_v45  ;;  %v857_v50 = vmul.f32 %v849_v46, %v849_v46 }
 0x163   : >> { %v863_v56 = vadd.f32 %v862_v0, %v855_v58 }
 0x165   : >> { %v864_v38 = vadd.f32 %v863_v56, %v856_v47 }
 0x167   : >> { %v865_v33 = vadd.f32 %v864_v38, %v857_v50 }
 0x169   : >> { %v866_v13 = vadd.f32 %v865_v33, %v858_v10  ;;  %243 = sbr.rel (!%p241_p11) target bundleno = 83 (0x53), region = 90 }
 0x16b   : >> { %v867_v11 = vadd.f32 %v866_v13, %v859_v52 }
 0x16d   : >> { %v868_v12 = vadd.f32 %v867_v11, %v860_v49  }
 0x16f   : >> { %v2312_v9 = vmov %v868_v12  ;;  %869 = vadd.xlane.f32.xlu0 (%p241_p11), %v868_v12 }
 0x1fc   : > { %v870_v9 = vpop.xlane.xlu0 %869 }
 0x1fd   : > { %v871_v14 = vrot.slane %v870_v9, 4 }
 0x1ff   : > { %v872_v15 = vadd.f32 %v871_v14, %v870_v9 }
 0x201   : > { %v873_v16 = vrot.slane %v872_v15, 2 }
 0x203   : > { %v874_v17 = vadd.f32 %v873_v16, %v872_v15 }
 0x205   : > { %v875_v18 = vrot.slane %v874_v17, 1 }
 0x207   : > { %v876_v19 = vadd.f32 %v875_v18, %v874_v17 }
 0x209   : > { %1023 = vpush %v876_v19 }
 0x23a   : > { %s1024_s9 = spop %1023 }
 0x23b   : > { %v878_v20 = vstv %s1024_s9 }
 0x23c   : > { %880 = vst.msk [vmem:[%s229_s28] sm:$0x1] %vm879_vm2, %v878_v20 }
 0x23d PF: > { %s18_s14 = sadd.s32 1, %s1265_s14   ;;  %s2313_s9 = smov %s1249_s10 }
 0x23e   : > { %p15_p4 = scmp.ge.s32.totalorder %s18_s14, 4   ;;  %s2314_s10 = smov %s1253_s11 }
 0x23f   : > { %s2315_s11 = smov %s1359_s21  ;;  %s2316_s12 = smov %s1261_s13 }
 0x240   : > { %s2317_s13 = smov %s2319_s16  ;;  %17 = sbr.rel (!%p15_p4) target bundleno = 6 (0x6), region = 101 }
 0x247   :  { %904 = vsyncpa [#allocation3], 1 }
 0x248   :  { %906 = vsyncpa [#allocation3 + $0x1], 1 }
 0x249   :  { %907 = vsyncpa [#allocation5], 1 }
 0x24a   :  { %909 = vsyncpa [#allocation5 + $0x1], 1 }

</bundles_post_ra>
